<compile_context>
chip_gen: v5e
topology: v5e:2x2
jax: 0.10.0
libtpu: 0.0.40
codegen_flags: <defaults>
</compile_context>

<pallas_src>
import functools
import math

import jax
import jax.numpy as jnp
from jax.experimental import pallas as pl
from jax.experimental.pallas import tpu as pltpu


# ---------------------------------------------------------------------------
# In-kernel helpers — elementwise math in f32, matmuls bf16 -> f32 accumulate
# ---------------------------------------------------------------------------
def _layernorm(x, eps=1e-6):
    # LayerNorm over last dim, no affine (elementwise_affine=False, eps=1e-6).
    mu = jnp.mean(x, axis=-1, keepdims=True)
    xc = x - mu
    var = jnp.mean(xc * xc, axis=-1, keepdims=True)
    return xc * jax.lax.rsqrt(var + eps)


def _gelu_tanh(x):
    # GELU(approximate='tanh')
    c0 = math.sqrt(2.0 / math.pi)
    return 0.5 * x * (1.0 + jnp.tanh(c0 * (x + 0.044715 * x * x * x)))


def _silu(x):
    # sigmoid lowers to the EUP logistic path.
    return x * jax.nn.sigmoid(x)


def _modulate(x, shift, scale):
    # x: (N, C); shift/scale: (1, C) -> broadcast over tokens.
    return x * (1.0 + scale) + shift


def _linear(x, w_ref, b_ref):
    # bf16 MXU inputs, f32 accumulation, f32 bias add.
    return jnp.dot(x.astype(jnp.bfloat16), w_ref[...],
                   preferred_element_type=jnp.float32) + b_ref[...]


# ---------------------------------------------------------------------------
# Fused CrossDiTBlock kernel (one grid step == one batch element)
# ---------------------------------------------------------------------------
def _cross_dit_kernel(
    # inputs (per-batch blocks)
    x_ref, cond_ref, c_ref,
    # adaLN — fused: columns [0:6C] = x branch, [6C:12C] = cond branch
    w_ada, b_ada,
    # attention (Q columns of w_qkv/b_qkv already carry the 1/sqrt(D) scale)
    w_qkv, b_qkv, w_qkv_c, b_qkv_c, w_proj, b_proj, w_proj_c, b_proj_c,
    # MLPs
    w_fc1, b_fc1, w_fc2, b_fc2, w_fc1c, b_fc1c, w_fc2c, b_fc2c,
    # outputs
    ox_ref, oc_ref,
    *, num_heads,
):
    C = x_ref.shape[-1]
    H = num_heads
    D = C // H

    x = x_ref[0]          # (N, C)   f32
    cond = cond_ref[0]    # (Nc, C)  f32
    cvec = c_ref[0]       # (1, C)   f32

    # ---- adaLN: one (1,C)x(C,12C) matvec covers both branches ---------------
    ada = _linear(_silu(cvec), w_ada, b_ada)      # (1, 12C)

    def chunk(i):
        return ada[:, i * C:(i + 1) * C]

    shift_msa, scale_msa, gate_msa = chunk(0), chunk(1), chunk(2)
    shift_mlp, scale_mlp, gate_mlp = chunk(3), chunk(4), chunk(5)
    shift_msa_c, scale_msa_c, gate_msa_c = chunk(6), chunk(7), chunk(8)
    shift_mlp_c, scale_mlp_c, gate_mlp_c = chunk(9), chunk(10), chunk(11)

    # ---- attention branch (joint over x and cond tokens) --------------------
    x_mod = _modulate(_layernorm(x), shift_msa, scale_msa)            # (N, C)
    cond_mod = _modulate(_layernorm(cond), shift_msa_c, scale_msa_c)  # (Nc, C)

    # One wide qkv matmul per source; cast to bf16 BEFORE the head reorg so
    # every relayout copy moves half the bytes.
    qkv_x = _linear(x_mod, w_qkv, b_qkv).astype(jnp.bfloat16)         # (N, 3C)
    qkv_c = _linear(cond_mod, w_qkv_c, b_qkv_c).astype(jnp.bfloat16)  # (Nc, 3C)

    def head_stack(m, base):
        # (n, 3C) bf16 -> (H, n, D) bf16, head-major for batched einsum.
        # TODO(synk): collapse into a single pltpu.einshape relayout once the
        # lane-dim split is supported for D < 128.
        return jnp.stack(
            [m[:, base + h * D: base + (h + 1) * D] for h in range(H)], axis=0)

    qx, kx, vx = (head_stack(qkv_x, i * C) for i in range(3))   # (H, N, D)
    qc, kc, vc = (head_stack(qkv_c, i * C) for i in range(3))   # (H, Nc, D)

    def attend(q):
        # q: (H, nq, D) bf16. Keys/values stay split by source (no sublane
        # concat); the softmax is jointly normalized over both key sets,
        # exactly equivalent to softmax over concat(K_x, K_c).
        s_x = jnp.einsum('hqd,hkd->hqk', q, kx, preferred_element_type=jnp.float32)
        s_c = jnp.einsum('hqd,hkd->hqk', q, kc, preferred_element_type=jnp.float32)
        m = jnp.maximum(jnp.max(s_x, axis=-1, keepdims=True),
                        jnp.max(s_c, axis=-1, keepdims=True))
        # TODO(synk): on v6e/v7x cast (s - m) to bf16 before exp (2x EUP
        # throughput); keep f32 on v5e (no bf16 EUP path).
        p_x = jnp.exp(s_x - m)
        p_c = jnp.exp(s_c - m)
        inv_l = pl.reciprocal(
            jnp.sum(p_x, axis=-1, keepdims=True)
            + jnp.sum(p_c, axis=-1, keepdims=True), approx=True)
        o = jnp.einsum('hqk,hkd->hqd', p_x.astype(jnp.bfloat16), vx,
                       preferred_element_type=jnp.float32)
        o = o + jnp.einsum('hqk,hkd->hqd', p_c.astype(jnp.bfloat16), vc,
                           preferred_element_type=jnp.float32)
        return o * inv_l                                    # (H, nq, D) f32

    def merge_proj(o, w_ref, b_ref):
        # Head-merge folded into the projection matmul:
        #   concat_h(o_h) @ W == Σ_h o_h @ W[h·D:(h+1)·D, :]
        # -> no (T, C) scratch, no masked per-head stores, no lane concat;
        #    produces a lane-dense (nq, C) result directly from accumulation.
        acc = jnp.zeros((o.shape[1], C), jnp.float32)
        for h in range(H):
            acc = acc + jnp.dot(o[h].astype(jnp.bfloat16),
                                w_ref[h * D:(h + 1) * D, :],
                                preferred_element_type=jnp.float32)
        return acc + b_ref[...]

    x_attn = merge_proj(attend(qx), w_proj, b_proj)       # (N, C)
    c_attn = merge_proj(attend(qc), w_proj_c, b_proj_c)   # (Nc, C)

    x = x + gate_msa * x_attn
    cond = cond + gate_msa_c * c_attn

    # ---- MLP branch ----------------------------------------------------------
    x_mod2 = _modulate(_layernorm(x), shift_mlp, scale_mlp)
    x = x + gate_mlp * _linear(_gelu_tanh(_linear(x_mod2, w_fc1, b_fc1)), w_fc2, b_fc2)

    c_mod2 = _modulate(_layernorm(cond), shift_mlp_c, scale_mlp_c)
    cond = cond + gate_mlp_c * _linear(
        _gelu_tanh(_linear(c_mod2, w_fc1c, b_fc1c)), w_fc2c, b_fc2c)

    ox_ref[0] = x
    oc_ref[0] = cond


# ---------------------------------------------------------------------------
# One-time host-side weight preparation (cache the result; do NOT redo it
# every forward call — it costs a full-weight-size multiply/cast in HBM).
# ---------------------------------------------------------------------------
def prepare_params(params, hidden_size, num_heads):
    C = hidden_size
    D = C // num_heads
    # Fold 1/sqrt(head_dim) into the Q columns of the qkv weights/biases.
    col_scale = jnp.concatenate(
        [jnp.full((C,), D ** (-0.5), jnp.float32), jnp.ones((2 * C,), jnp.float32)]
    )[None, :]
    # Fuse the two adaLN projections into one (C, 12C) matrix.
    w_ada = jnp.concatenate([params["w_ada"], params["w_ada_c"]], axis=1)
    b_ada = jnp.concatenate([params["b_ada"], params["b_ada_c"]], axis=1)

    def w(a):
        return a.astype(jnp.bfloat16)   # bf16 MXU inputs, halved HBM/VMEM traffic

    def b(a):
        return a.astype(jnp.float32)    # biases added after f32 accumulation

    return (
        w(w_ada), b(b_ada),
        w(params["w_qkv"] * col_scale), b(params["b_qkv"] * col_scale),
        w(params["w_qkv_c"] * col_scale), b(params["b_qkv_c"] * col_scale),
        w(params["w_proj"]), b(params["b_proj"]),
        w(params["w_proj_c"]), b(params["b_proj_c"]),
        w(params["w_fc1"]), b(params["b_fc1"]),
        w(params["w_fc2"]), b(params["b_fc2"]),
        w(params["w_fc1c"]), b(params["b_fc1c"]),
        w(params["w_fc2c"]), b(params["b_fc2c"]),
    )


def _weight_spec(a):
    # Constant index map across the batch grid -> single-buffer the resident
    # weight set (default double-buffering is pure VMEM waste here).
    try:
        return pl.BlockSpec(a.shape, lambda b: (0, 0), pipeline_mode=pl.Buffered(1))
    except TypeError:  # older BlockSpec without pipeline_mode
        return pl.BlockSpec(a.shape, lambda b: (0, 0))


def _vmem_limit_bytes():
    # Generation-aware budget: physical VMEM minus headroom for internal
    # scratch (v5e/v6e 128 MiB -> ~112 MiB, v7x 64 MiB -> 48 MiB).
    try:
        cap = int(pltpu.get_tpu_info().vmem_capacity_bytes)
    except Exception:
        cap = 64 * 1024 * 1024
    return max(cap - 16 * 1024 * 1024, 32 * 1024 * 1024)


def cross_dit_block(x, cond, c, prepared_weights, num_heads):
    B, N, C = x.shape
    _, Nc, _ = cond.shape
    c3 = c[:, None, :]  # (B, 1, C)

    in_specs = [
        pl.BlockSpec((1, N, C), lambda b: (b, 0, 0)),
        pl.BlockSpec((1, Nc, C), lambda b: (b, 0, 0)),
        pl.BlockSpec((1, 1, C), lambda b: (b, 0, 0)),
    ] + [_weight_spec(w) for w in prepared_weights]

    out_specs = (
        pl.BlockSpec((1, N, C), lambda b: (b, 0, 0)),
        pl.BlockSpec((1, Nc, C), lambda b: (b, 0, 0)),
    )

    kernel = functools.partial(_cross_dit_kernel, num_heads=num_heads)

    return pl.pallas_call(
        kernel,
        out_shape=(
            jax.ShapeDtypeStruct((B, N, C), jnp.float32),
            jax.ShapeDtypeStruct((B, Nc, C), jnp.float32),
        ),
        grid=(B,),
        in_specs=in_specs,
        out_specs=out_specs,
        compiler_params=pltpu.CompilerParams(
            dimension_semantics=("parallel",),   # independent batch -> both TCs on v7x
            vmem_limit_bytes=_vmem_limit_bytes(),
        ),
    )(x, cond, c3, *prepared_weights)


# ---------------------------------------------------------------------------
# Deterministic parameter init (shapes follow CrossDiTBlock.__init__)
# ---------------------------------------------------------------------------
def init_params(key, hidden_size, mlp_ratio=4.0):
    C = hidden_size
    Hm = int(hidden_size * mlp_ratio)
    keys = jax.random.split(key, 16)

    def w(k, shape):
        return (0.02 * jax.random.normal(k, shape)).astype(jnp.float32)

    def b(k, n):
        return (0.02 * jax.random.normal(k, (1, n))).astype(jnp.float32)

    return {
        # adaLN: Linear(C, 6C) for x and cond branches
        "w_ada": w(keys[0], (C, 6 * C)), "b_ada": b(keys[1], 6 * C),
        "w_ada_c": w(keys[2], (C, 6 * C)), "b_ada_c": b(keys[3], 6 * C),
        # attention: qkv Linear(C, 3C) with bias, proj Linear(C, C)
        "w_qkv": w(keys[4], (C, 3 * C)), "b_qkv": b(keys[5], 3 * C),
        "w_qkv_c": w(keys[6], (C, 3 * C)), "b_qkv_c": b(keys[7], 3 * C),
        "w_proj": w(keys[8], (C, C)), "b_proj": b(keys[9], C),
        "w_proj_c": w(keys[10], (C, C)), "b_proj_c": b(keys[11], C),
        # MLPs: Linear(C, Hm) -> GELU(tanh) -> Linear(Hm, C)
        "w_fc1": w(keys[12], (C, Hm)), "b_fc1": b(keys[13], Hm),
        "w_fc2": w(keys[14], (Hm, C)), "b_fc2": b(keys[15], C),
        "w_fc1c": w(keys[12], (C, Hm)) * 1.5, "b_fc1c": b(keys[13], Hm) * 1.5,
        "w_fc2c": w(keys[14], (Hm, C)) * 1.5, "b_fc2c": b(keys[15], C) * 1.5,
    }


# ---------------------------------------------------------------------------
# Pure-JAX reference mirroring the PyTorch forward (f32, exact softmax)
# ---------------------------------------------------------------------------
def _reference(x, cond, c, params, num_heads):
    C = x.shape[-1]
    H = num_heads
    D = C // H
    B, N, _ = x.shape
    Nc = cond.shape[1]

    def ln(t):
        mu = jnp.mean(t, -1, keepdims=True)
        var = jnp.var(t, -1, keepdims=True)
        return (t - mu) * jax.lax.rsqrt(var + 1e-6)

    def gelu(t):
        return 0.5 * t * (1.0 + jnp.tanh(math.sqrt(2.0 / math.pi)
                                         * (t + 0.044715 * t ** 3)))

    def mod(t, shift, scale):
        return t * (1 + scale[:, None, :]) + shift[:, None, :]

    silu_c = c * jax.nn.sigmoid(c)
    ada = silu_c @ params["w_ada"] + params["b_ada"]
    ada_c = silu_c @ params["w_ada_c"] + params["b_ada_c"]
    sm, scm, gm, sp, scp, gp = jnp.split(ada, 6, axis=-1)
    sm_c, scm_c, gm_c, sp_c, scp_c, gp_c = jnp.split(ada_c, 6, axis=-1)

    x_t = mod(ln(x), sm, scm)
    c_t = mod(ln(cond), sm_c, scm_c)

    def split_qkv(t, n):
        t = t.reshape(B, n, 3, H, D).transpose(2, 0, 3, 1, 4)
        return t[0], t[1], t[2]

    q, k, v = split_qkv(x_t @ params["w_qkv"] + params["b_qkv"], N)
    q_c, k_c, v_c = split_qkv(c_t @ params["w_qkv_c"] + params["b_qkv_c"], Nc)
    q = jnp.concatenate([q, q_c], axis=2)
    k = jnp.concatenate([k, k_c], axis=2)
    v = jnp.concatenate([v, v_c], axis=2)
    attn = jax.nn.softmax((q * (D ** -0.5)) @ jnp.swapaxes(k, -1, -2), axis=-1)
    out = jnp.swapaxes(attn @ v, 1, 2).reshape(B, N + Nc, C)
    x_a = out[:, :N] @ params["w_proj"] + params["b_proj"]
    c_a = out[:, N:] @ params["w_proj_c"] + params["b_proj_c"]
    x1 = x + gm[:, None, :] * x_a
    c1 = cond + gm_c[:, None, :] * c_a

    x_m = mod(ln(x1), sp, scp)
    x2 = x1 + gp[:, None, :] * (
        gelu(x_m @ params["w_fc1"] + params["b_fc1"]) @ params["w_fc2"] + params["b_fc2"])
    c_m = mod(ln(c1), sp_c, scp_c)
    c2 = c1 + gp_c[:, None, :] * (
        gelu(c_m @ params["w_fc1c"] + params["b_fc1c"]) @ params["w_fc2c"] + params["b_fc2c"])
    return x2, c2


if __name__ == "__main__":
    B, N, Nc, C, num_heads = 2, 8, 4, 32, 4

    key = jax.random.PRNGKey(0)
    kx, kc, kv, kp = jax.random.split(key, 4)
    x = jax.random.normal(kx, (B, N, C), dtype=jnp.float32)
    cond = jax.random.normal(kc, (B, Nc, C), dtype=jnp.float32)
    cvec = jax.random.normal(kv, (B, C), dtype=jnp.float32)
    params = init_params(kp, C, mlp_ratio=4.0)

    # One-time weight prep (fold Q scale, fuse adaLN, bf16 cast) — cache this.
    weights = prepare_params(params, C, num_heads)

    x_out, cond_out = cross_dit_block(x, cond, cvec, weights, num_heads)
    jax.block_until_ready((x_out, cond_out))

    assert x_out.shape == (B, N, C) and cond_out.shape == (B, Nc, C)
    assert jnp.all(jnp.isfinite(x_out)) and jnp.all(jnp.isfinite(cond_out))

    x_ref_out, cond_ref_out = _reference(x, cond, cvec, params, num_heads)
    err = max(float(jnp.max(jnp.abs(x_out - x_ref_out))),
              float(jnp.max(jnp.abs(cond_out - cond_ref_out))))
    # bf16 matmuls + approx reciprocal vs f32 reference -> loose tolerance.
    assert err < 5e-2, f"max abs error vs f32 reference: {err}"

    print("KERNEL_OK")
</pallas_src>

<mosaic_0001>
module attributes {stable_mosaic.version = 11 : i64} {
  func.func @_cross_dit_kernel(%arg0: i32, %arg1: memref<1x8x32xf32, #tpu.memory_space<vmem>>, %arg2: memref<1x4x32xf32, #tpu.memory_space<vmem>>, %arg3: memref<1x1x32xf32, #tpu.memory_space<vmem>>, %arg4: memref<32x384xbf16, #tpu.memory_space<vmem>>, %arg5: memref<1x384xf32, #tpu.memory_space<vmem>>, %arg6: memref<32x96xbf16, #tpu.memory_space<vmem>>, %arg7: memref<1x96xf32, #tpu.memory_space<vmem>>, %arg8: memref<32x96xbf16, #tpu.memory_space<vmem>>, %arg9: memref<1x96xf32, #tpu.memory_space<vmem>>, %arg10: memref<32x32xbf16, #tpu.memory_space<vmem>>, %arg11: memref<1x32xf32, #tpu.memory_space<vmem>>, %arg12: memref<32x32xbf16, #tpu.memory_space<vmem>>, %arg13: memref<1x32xf32, #tpu.memory_space<vmem>>, %arg14: memref<32x128xbf16, #tpu.memory_space<vmem>>, %arg15: memref<1x128xf32, #tpu.memory_space<vmem>>, %arg16: memref<128x32xbf16, #tpu.memory_space<vmem>>, %arg17: memref<1x32xf32, #tpu.memory_space<vmem>>, %arg18: memref<32x128xbf16, #tpu.memory_space<vmem>>, %arg19: memref<1x128xf32, #tpu.memory_space<vmem>>, %arg20: memref<128x32xbf16, #tpu.memory_space<vmem>>, %arg21: memref<1x32xf32, #tpu.memory_space<vmem>>, %arg22: memref<1x8x32xf32, #tpu.memory_space<vmem>>, %arg23: memref<1x4x32xf32, #tpu.memory_space<vmem>>) attributes {dimension_semantics = [#tpu.dimension_semantics<parallel>], iteration_bounds = array<i64: 2>, scalar_prefetch = 0 : i64, scratch_operands = 0 : i64, tpu.core_type = #tpu.core_type<tc>, window_params = [{transform_indices = @transform_0, window_bounds = array<i64: 1, 8, 32>}, {transform_indices = @transform_1, window_bounds = array<i64: 1, 4, 32>}, {transform_indices = @transform_2, window_bounds = array<i64: 1, 1, 32>}, {pipeline_mode = #tpu.pipeline_mode<synchronous>, transform_indices = @transform_3, window_bounds = array<i64: 32, 384>}, {pipeline_mode = #tpu.pipeline_mode<synchronous>, transform_indices = @transform_4, window_bounds = array<i64: 1, 384>}, {pipeline_mode = #tpu.pipeline_mode<synchronous>, transform_indices = @transform_5, window_bounds = array<i64: 32, 96>}, {pipeline_mode = #tpu.pipeline_mode<synchronous>, transform_indices = @transform_6, window_bounds = array<i64: 1, 96>}, {pipeline_mode = #tpu.pipeline_mode<synchronous>, transform_indices = @transform_7, window_bounds = array<i64: 32, 96>}, {pipeline_mode = #tpu.pipeline_mode<synchronous>, transform_indices = @transform_8, window_bounds = array<i64: 1, 96>}, {pipeline_mode = #tpu.pipeline_mode<synchronous>, transform_indices = @transform_9, window_bounds = array<i64: 32, 32>}, {pipeline_mode = #tpu.pipeline_mode<synchronous>, transform_indices = @transform_10, window_bounds = array<i64: 1, 32>}, {pipeline_mode = #tpu.pipeline_mode<synchronous>, transform_indices = @transform_11, window_bounds = array<i64: 32, 32>}, {pipeline_mode = #tpu.pipeline_mode<synchronous>, transform_indices = @transform_12, window_bounds = array<i64: 1, 32>}, {pipeline_mode = #tpu.pipeline_mode<synchronous>, transform_indices = @transform_13, window_bounds = array<i64: 32, 128>}, {pipeline_mode = #tpu.pipeline_mode<synchronous>, transform_indices = @transform_14, window_bounds = array<i64: 1, 128>}, {pipeline_mode = #tpu.pipeline_mode<synchronous>, transform_indices = @transform_15, window_bounds = array<i64: 128, 32>}, {pipeline_mode = #tpu.pipeline_mode<synchronous>, transform_indices = @transform_16, window_bounds = array<i64: 1, 32>}, {pipeline_mode = #tpu.pipeline_mode<synchronous>, transform_indices = @transform_17, window_bounds = array<i64: 32, 128>}, {pipeline_mode = #tpu.pipeline_mode<synchronous>, transform_indices = @transform_18, window_bounds = array<i64: 1, 128>}, {pipeline_mode = #tpu.pipeline_mode<synchronous>, transform_indices = @transform_19, window_bounds = array<i64: 128, 32>}, {pipeline_mode = #tpu.pipeline_mode<synchronous>, transform_indices = @transform_20, window_bounds = array<i64: 1, 32>}, {transform_indices = @transform_21, window_bounds = array<i64: 1, 8, 32>}, {transform_indices = @transform_22, window_bounds = array<i64: 1, 4, 32>}]} {
    %c0 = arith.constant 0 : index
    %c0_0 = arith.constant 0 : index
    %c0_1 = arith.constant 0 : index
    %0 = vector.load %arg1[%c0, %c0_0, %c0_1] : memref<1x8x32xf32, #tpu.memory_space<vmem>>, vector<1x8x32xf32>
    %1 = vector.shape_cast %0 : vector<1x8x32xf32> to vector<8x32xf32>
    %c0_2 = arith.constant 0 : index
    %c0_3 = arith.constant 0 : index
    %c0_4 = arith.constant 0 : index
    %2 = vector.load %arg2[%c0_2, %c0_3, %c0_4] : memref<1x4x32xf32, #tpu.memory_space<vmem>>, vector<1x4x32xf32>
    %3 = vector.shape_cast %2 : vector<1x4x32xf32> to vector<4x32xf32>
    %c0_5 = arith.constant 0 : index
    %c0_6 = arith.constant 0 : index
    %c0_7 = arith.constant 0 : index
    %4 = vector.load %arg3[%c0_5, %c0_6, %c0_7] : memref<1x1x32xf32, #tpu.memory_space<vmem>>, vector<1x1x32xf32>
    %5 = vector.shape_cast %4 : vector<1x1x32xf32> to vector<1x32xf32>
    %6 = arith.negf %5 : vector<1x32xf32>
    %7 = math.exp %6 : vector<1x32xf32>
    %cst = arith.constant 1.000000e+00 : f32
    %8 = vector.broadcast %cst : f32 to vector<1x32xf32>
    %9 = arith.addf %8, %7 : vector<1x32xf32>
    %10 = arith.divf %8, %9 : vector<1x32xf32>
    %11 = arith.mulf %5, %10 : vector<1x32xf32>
    %12 = arith.truncf %11 : vector<1x32xf32> to vector<1x32xbf16>
    %c0_8 = arith.constant 0 : index
    %c0_9 = arith.constant 0 : index
    %13 = vector.load %arg4[%c0_8, %c0_9] : memref<32x384xbf16, #tpu.memory_space<vmem>>, vector<32x384xbf16>
    %cst_10 = arith.constant dense<0.000000e+00> : vector<1x384xf32>
    %14 = tpu.matmul %12, %13, %cst_10 {dimension_numbers = #tpu.dot_dimension_numbers<[1], [0], [0], [1], [0, 0, 1, 1], [], []>} : vector<1x32xbf16>, vector<32x384xbf16>, vector<1x384xf32> -> vector<1x384xf32>
    %c0_11 = arith.constant 0 : index
    %c0_12 = arith.constant 0 : index
    %15 = vector.load %arg5[%c0_11, %c0_12] : memref<1x384xf32, #tpu.memory_space<vmem>>, vector<1x384xf32>
    %16 = arith.addf %14, %15 : vector<1x384xf32>
    %17 = vector.extract_strided_slice %16 {offsets = [0, 0], sizes = [1, 32], strides = [1, 1]} : vector<1x384xf32> to vector<1x32xf32>
    %18 = vector.extract_strided_slice %16 {offsets = [0, 32], sizes = [1, 32], strides = [1, 1]} : vector<1x384xf32> to vector<1x32xf32>
    %19 = vector.extract_strided_slice %16 {offsets = [0, 64], sizes = [1, 32], strides = [1, 1]} : vector<1x384xf32> to vector<1x32xf32>
    %20 = vector.extract_strided_slice %16 {offsets = [0, 96], sizes = [1, 32], strides = [1, 1]} : vector<1x384xf32> to vector<1x32xf32>
    %21 = vector.extract_strided_slice %16 {offsets = [0, 128], sizes = [1, 32], strides = [1, 1]} : vector<1x384xf32> to vector<1x32xf32>
    %22 = vector.extract_strided_slice %16 {offsets = [0, 160], sizes = [1, 32], strides = [1, 1]} : vector<1x384xf32> to vector<1x32xf32>
    %23 = vector.extract_strided_slice %16 {offsets = [0, 192], sizes = [1, 32], strides = [1, 1]} : vector<1x384xf32> to vector<1x32xf32>
    %24 = vector.extract_strided_slice %16 {offsets = [0, 224], sizes = [1, 32], strides = [1, 1]} : vector<1x384xf32> to vector<1x32xf32>
    %25 = vector.extract_strided_slice %16 {offsets = [0, 256], sizes = [1, 32], strides = [1, 1]} : vector<1x384xf32> to vector<1x32xf32>
    %26 = vector.extract_strided_slice %16 {offsets = [0, 288], sizes = [1, 32], strides = [1, 1]} : vector<1x384xf32> to vector<1x32xf32>
    %27 = vector.extract_strided_slice %16 {offsets = [0, 320], sizes = [1, 32], strides = [1, 1]} : vector<1x384xf32> to vector<1x32xf32>
    %28 = vector.extract_strided_slice %16 {offsets = [0, 352], sizes = [1, 32], strides = [1, 1]} : vector<1x384xf32> to vector<1x32xf32>
    %cst_13 = arith.constant dense<0.000000e+00> : vector<8xf32>
    %29 = vector.multi_reduction <add>, %1, %cst_13 [1] : vector<8x32xf32> to vector<8xf32>
    %30 = vector.shape_cast %29 : vector<8xf32> to vector<8x1xf32>
    %cst_14 = arith.constant 3.200000e+01 : f32
    %31 = vector.broadcast %cst_14 : f32 to vector<8x1xf32>
    %32 = arith.divf %30, %31 : vector<8x1xf32>
    %33 = vector.broadcast %32 : vector<8x1xf32> to vector<8x32xf32>
    %34 = arith.subf %1, %33 : vector<8x32xf32>
    %35 = arith.mulf %34, %34 : vector<8x32xf32>
    %cst_15 = arith.constant dense<0.000000e+00> : vector<8xf32>
    %36 = vector.multi_reduction <add>, %35, %cst_15 [1] : vector<8x32xf32> to vector<8xf32>
    %37 = vector.shape_cast %36 : vector<8xf32> to vector<8x1xf32>
    %cst_16 = arith.constant 3.200000e+01 : f32
    %38 = vector.broadcast %cst_16 : f32 to vector<8x1xf32>
    %39 = arith.divf %37, %38 : vector<8x1xf32>
    %cst_17 = arith.constant 9.99999997E-7 : f32
    %40 = vector.broadcast %cst_17 : f32 to vector<8x1xf32>
    %41 = arith.addf %39, %40 : vector<8x1xf32>
    %42 = math.rsqrt %41 : vector<8x1xf32>
    %43 = vector.broadcast %42 : vector<8x1xf32> to vector<8x32xf32>
    %44 = arith.mulf %34, %43 : vector<8x32xf32>
    %cst_18 = arith.constant 1.000000e+00 : f32
    %45 = vector.broadcast %cst_18 : f32 to vector<1x32xf32>
    %46 = arith.addf %45, %18 : vector<1x32xf32>
    %47 = vector.broadcast %46 : vector<1x32xf32> to vector<8x32xf32>
    %48 = arith.mulf %44, %47 : vector<8x32xf32>
    %49 = vector.broadcast %17 : vector<1x32xf32> to vector<8x32xf32>
    %50 = arith.addf %48, %49 : vector<8x32xf32>
    %cst_19 = arith.constant dense<0.000000e+00> : vector<4xf32>
    %51 = vector.multi_reduction <add>, %3, %cst_19 [1] : vector<4x32xf32> to vector<4xf32>
    %52 = vector.shape_cast %51 : vector<4xf32> to vector<4x1xf32>
    %cst_20 = arith.constant 3.200000e+01 : f32
    %53 = vector.broadcast %cst_20 : f32 to vector<4x1xf32>
    %54 = arith.divf %52, %53 : vector<4x1xf32>
    %55 = vector.broadcast %54 : vector<4x1xf32> to vector<4x32xf32>
    %56 = arith.subf %3, %55 : vector<4x32xf32>
    %57 = arith.mulf %56, %56 : vector<4x32xf32>
    %cst_21 = arith.constant dense<0.000000e+00> : vector<4xf32>
    %58 = vector.multi_reduction <add>, %57, %cst_21 [1] : vector<4x32xf32> to vector<4xf32>
    %59 = vector.shape_cast %58 : vector<4xf32> to vector<4x1xf32>
    %cst_22 = arith.constant 3.200000e+01 : f32
    %60 = vector.broadcast %cst_22 : f32 to vector<4x1xf32>
    %61 = arith.divf %59, %60 : vector<4x1xf32>
    %cst_23 = arith.constant 9.99999997E-7 : f32
    %62 = vector.broadcast %cst_23 : f32 to vector<4x1xf32>
    %63 = arith.addf %61, %62 : vector<4x1xf32>
    %64 = math.rsqrt %63 : vector<4x1xf32>
    %65 = vector.broadcast %64 : vector<4x1xf32> to vector<4x32xf32>
    %66 = arith.mulf %56, %65 : vector<4x32xf32>
    %cst_24 = arith.constant 1.000000e+00 : f32
    %67 = vector.broadcast %cst_24 : f32 to vector<1x32xf32>
    %68 = arith.addf %67, %24 : vector<1x32xf32>
    %69 = vector.broadcast %68 : vector<1x32xf32> to vector<4x32xf32>
    %70 = arith.mulf %66, %69 : vector<4x32xf32>
    %71 = vector.broadcast %23 : vector<1x32xf32> to vector<4x32xf32>
    %72 = arith.addf %70, %71 : vector<4x32xf32>
    %73 = arith.truncf %50 : vector<8x32xf32> to vector<8x32xbf16>
    %c0_25 = arith.constant 0 : index
    %c0_26 = arith.constant 0 : index
    %74 = vector.load %arg6[%c0_25, %c0_26] : memref<32x96xbf16, #tpu.memory_space<vmem>>, vector<32x96xbf16>
    %cst_27 = arith.constant dense<0.000000e+00> : vector<8x96xf32>
    %75 = tpu.matmul %73, %74, %cst_27 {dimension_numbers = #tpu.dot_dimension_numbers<[1], [0], [0], [1], [0, 0, 1, 1], [], []>} : vector<8x32xbf16>, vector<32x96xbf16>, vector<8x96xf32> -> vector<8x96xf32>
    %c0_28 = arith.constant 0 : index
    %c0_29 = arith.constant 0 : index
    %76 = vector.load %arg7[%c0_28, %c0_29] : memref<1x96xf32, #tpu.memory_space<vmem>>, vector<1x96xf32>
    %77 = vector.broadcast %76 : vector<1x96xf32> to vector<8x96xf32>
    %78 = arith.addf %75, %77 : vector<8x96xf32>
    %79 = arith.truncf %78 : vector<8x96xf32> to vector<8x96xbf16>
    %80 = arith.truncf %72 : vector<4x32xf32> to vector<4x32xbf16>
    %c0_30 = arith.constant 0 : index
    %c0_31 = arith.constant 0 : index
    %81 = vector.load %arg8[%c0_30, %c0_31] : memref<32x96xbf16, #tpu.memory_space<vmem>>, vector<32x96xbf16>
    %cst_32 = arith.constant dense<0.000000e+00> : vector<4x96xf32>
    %82 = tpu.matmul %80, %81, %cst_32 {dimension_numbers = #tpu.dot_dimension_numbers<[1], [0], [0], [1], [0, 0, 1, 1], [], []>} : vector<4x32xbf16>, vector<32x96xbf16>, vector<4x96xf32> -> vector<4x96xf32>
    %c0_33 = arith.constant 0 : index
    %c0_34 = arith.constant 0 : index
    %83 = vector.load %arg9[%c0_33, %c0_34] : memref<1x96xf32, #tpu.memory_space<vmem>>, vector<1x96xf32>
    %84 = vector.broadcast %83 : vector<1x96xf32> to vector<4x96xf32>
    %85 = arith.addf %82, %84 : vector<4x96xf32>
    %86 = arith.truncf %85 : vector<4x96xf32> to vector<4x96xbf16>
    %87 = vector.extract_strided_slice %79 {offsets = [0, 0], sizes = [8, 8], strides = [1, 1]} : vector<8x96xbf16> to vector<8x8xbf16>
    %88 = vector.extract_strided_slice %79 {offsets = [0, 8], sizes = [8, 8], strides = [1, 1]} : vector<8x96xbf16> to vector<8x8xbf16>
    %89 = vector.extract_strided_slice %79 {offsets = [0, 16], sizes = [8, 8], strides = [1, 1]} : vector<8x96xbf16> to vector<8x8xbf16>
    %90 = vector.extract_strided_slice %79 {offsets = [0, 24], sizes = [8, 8], strides = [1, 1]} : vector<8x96xbf16> to vector<8x8xbf16>
    %91 = vector.shape_cast %87 : vector<8x8xbf16> to vector<1x8x8xbf16>
    %92 = vector.shape_cast %88 : vector<8x8xbf16> to vector<1x8x8xbf16>
    %93 = vector.shape_cast %89 : vector<8x8xbf16> to vector<1x8x8xbf16>
    %94 = vector.shape_cast %90 : vector<8x8xbf16> to vector<1x8x8xbf16>
    %95 = tpu.concatenate %91, %92, %93, %94 in 0 : vector<1x8x8xbf16>, vector<1x8x8xbf16>, vector<1x8x8xbf16>, vector<1x8x8xbf16> -> vector<4x8x8xbf16>
    %96 = vector.extract_strided_slice %79 {offsets = [0, 32], sizes = [8, 8], strides = [1, 1]} : vector<8x96xbf16> to vector<8x8xbf16>
    %97 = vector.extract_strided_slice %79 {offsets = [0, 40], sizes = [8, 8], strides = [1, 1]} : vector<8x96xbf16> to vector<8x8xbf16>
    %98 = vector.extract_strided_slice %79 {offsets = [0, 48], sizes = [8, 8], strides = [1, 1]} : vector<8x96xbf16> to vector<8x8xbf16>
    %99 = vector.extract_strided_slice %79 {offsets = [0, 56], sizes = [8, 8], strides = [1, 1]} : vector<8x96xbf16> to vector<8x8xbf16>
    %100 = vector.shape_cast %96 : vector<8x8xbf16> to vector<1x8x8xbf16>
    %101 = vector.shape_cast %97 : vector<8x8xbf16> to vector<1x8x8xbf16>
    %102 = vector.shape_cast %98 : vector<8x8xbf16> to vector<1x8x8xbf16>
    %103 = vector.shape_cast %99 : vector<8x8xbf16> to vector<1x8x8xbf16>
    %104 = tpu.concatenate %100, %101, %102, %103 in 0 : vector<1x8x8xbf16>, vector<1x8x8xbf16>, vector<1x8x8xbf16>, vector<1x8x8xbf16> -> vector<4x8x8xbf16>
    %105 = vector.extract_strided_slice %79 {offsets = [0, 64], sizes = [8, 8], strides = [1, 1]} : vector<8x96xbf16> to vector<8x8xbf16>
    %106 = vector.extract_strided_slice %79 {offsets = [0, 72], sizes = [8, 8], strides = [1, 1]} : vector<8x96xbf16> to vector<8x8xbf16>
    %107 = vector.extract_strided_slice %79 {offsets = [0, 80], sizes = [8, 8], strides = [1, 1]} : vector<8x96xbf16> to vector<8x8xbf16>
    %108 = vector.extract_strided_slice %79 {offsets = [0, 88], sizes = [8, 8], strides = [1, 1]} : vector<8x96xbf16> to vector<8x8xbf16>
    %109 = vector.shape_cast %105 : vector<8x8xbf16> to vector<1x8x8xbf16>
    %110 = vector.shape_cast %106 : vector<8x8xbf16> to vector<1x8x8xbf16>
    %111 = vector.shape_cast %107 : vector<8x8xbf16> to vector<1x8x8xbf16>
    %112 = vector.shape_cast %108 : vector<8x8xbf16> to vector<1x8x8xbf16>
    %113 = tpu.concatenate %109, %110, %111, %112 in 0 : vector<1x8x8xbf16>, vector<1x8x8xbf16>, vector<1x8x8xbf16>, vector<1x8x8xbf16> -> vector<4x8x8xbf16>
    %114 = vector.extract_strided_slice %86 {offsets = [0, 0], sizes = [4, 8], strides = [1, 1]} : vector<4x96xbf16> to vector<4x8xbf16>
    %115 = vector.extract_strided_slice %86 {offsets = [0, 8], sizes = [4, 8], strides = [1, 1]} : vector<4x96xbf16> to vector<4x8xbf16>
    %116 = vector.extract_strided_slice %86 {offsets = [0, 16], sizes = [4, 8], strides = [1, 1]} : vector<4x96xbf16> to vector<4x8xbf16>
    %117 = vector.extract_strided_slice %86 {offsets = [0, 24], sizes = [4, 8], strides = [1, 1]} : vector<4x96xbf16> to vector<4x8xbf16>
    %118 = vector.shape_cast %114 : vector<4x8xbf16> to vector<1x4x8xbf16>
    %119 = vector.shape_cast %115 : vector<4x8xbf16> to vector<1x4x8xbf16>
    %120 = vector.shape_cast %116 : vector<4x8xbf16> to vector<1x4x8xbf16>
    %121 = vector.shape_cast %117 : vector<4x8xbf16> to vector<1x4x8xbf16>
    %122 = tpu.concatenate %118, %119, %120, %121 in 0 : vector<1x4x8xbf16>, vector<1x4x8xbf16>, vector<1x4x8xbf16>, vector<1x4x8xbf16> -> vector<4x4x8xbf16>
    %123 = vector.extract_strided_slice %86 {offsets = [0, 32], sizes = [4, 8], strides = [1, 1]} : vector<4x96xbf16> to vector<4x8xbf16>
    %124 = vector.extract_strided_slice %86 {offsets = [0, 40], sizes = [4, 8], strides = [1, 1]} : vector<4x96xbf16> to vector<4x8xbf16>
    %125 = vector.extract_strided_slice %86 {offsets = [0, 48], sizes = [4, 8], strides = [1, 1]} : vector<4x96xbf16> to vector<4x8xbf16>
    %126 = vector.extract_strided_slice %86 {offsets = [0, 56], sizes = [4, 8], strides = [1, 1]} : vector<4x96xbf16> to vector<4x8xbf16>
    %127 = vector.shape_cast %123 : vector<4x8xbf16> to vector<1x4x8xbf16>
    %128 = vector.shape_cast %124 : vector<4x8xbf16> to vector<1x4x8xbf16>
    %129 = vector.shape_cast %125 : vector<4x8xbf16> to vector<1x4x8xbf16>
    %130 = vector.shape_cast %126 : vector<4x8xbf16> to vector<1x4x8xbf16>
    %131 = tpu.concatenate %127, %128, %129, %130 in 0 : vector<1x4x8xbf16>, vector<1x4x8xbf16>, vector<1x4x8xbf16>, vector<1x4x8xbf16> -> vector<4x4x8xbf16>
    %132 = vector.extract_strided_slice %86 {offsets = [0, 64], sizes = [4, 8], strides = [1, 1]} : vector<4x96xbf16> to vector<4x8xbf16>
    %133 = vector.extract_strided_slice %86 {offsets = [0, 72], sizes = [4, 8], strides = [1, 1]} : vector<4x96xbf16> to vector<4x8xbf16>
    %134 = vector.extract_strided_slice %86 {offsets = [0, 80], sizes = [4, 8], strides = [1, 1]} : vector<4x96xbf16> to vector<4x8xbf16>
    %135 = vector.extract_strided_slice %86 {offsets = [0, 88], sizes = [4, 8], strides = [1, 1]} : vector<4x96xbf16> to vector<4x8xbf16>
    %136 = vector.shape_cast %132 : vector<4x8xbf16> to vector<1x4x8xbf16>
    %137 = vector.shape_cast %133 : vector<4x8xbf16> to vector<1x4x8xbf16>
    %138 = vector.shape_cast %134 : vector<4x8xbf16> to vector<1x4x8xbf16>
    %139 = vector.shape_cast %135 : vector<4x8xbf16> to vector<1x4x8xbf16>
    %140 = tpu.concatenate %136, %137, %138, %139 in 0 : vector<1x4x8xbf16>, vector<1x4x8xbf16>, vector<1x4x8xbf16>, vector<1x4x8xbf16> -> vector<4x4x8xbf16>
    "tpu.trace_start"() <{level = 10 : i32, message = "hqd,hkd->hqk"}> : () -> ()
    %cst_35 = arith.constant dense<0.000000e+00> : vector<4x8x8xf32>
    %141 = tpu.matmul %95, %104, %cst_35 {dimension_numbers = #tpu.dot_dimension_numbers<[2], [2], [1], [1], [0, 0, 0, 1, 1, 1], [0], [0]>} : vector<4x8x8xbf16>, vector<4x8x8xbf16>, vector<4x8x8xf32> -> vector<4x8x8xf32>
    %cst_36 = arith.constant dense<0.000000e+00> : vector<4x8x4xf32>
    %142 = tpu.matmul %95, %131, %cst_36 {dimension_numbers = #tpu.dot_dimension_numbers<[2], [2], [1], [1], [0, 0, 0, 1, 1, 1], [0], [0]>} : vector<4x8x8xbf16>, vector<4x4x8xbf16>, vector<4x8x4xf32> -> vector<4x8x4xf32>
    "tpu.trace_stop"() : () -> ()
    %cst_37 = arith.constant dense<0xFF800000> : vector<4x8xf32>
    %143 = vector.multi_reduction <maximumf>, %141, %cst_37 [2] : vector<4x8x8xf32> to vector<4x8xf32>
    %144 = vector.shape_cast %143 : vector<4x8xf32> to vector<4x8x1xf32>
    %cst_38 = arith.constant dense<0xFF800000> : vector<4x8xf32>
    %145 = vector.multi_reduction <maximumf>, %142, %cst_38 [2] : vector<4x8x4xf32> to vector<4x8xf32>
    %146 = vector.shape_cast %145 : vector<4x8xf32> to vector<4x8x1xf32>
    %147 = arith.maximumf %144, %146 : vector<4x8x1xf32>
    %148 = vector.broadcast %147 : vector<4x8x1xf32> to vector<4x8x8xf32>
    %149 = arith.subf %141, %148 : vector<4x8x8xf32>
    %150 = math.exp %149 : vector<4x8x8xf32>
    %151 = vector.broadcast %147 : vector<4x8x1xf32> to vector<4x8x4xf32>
    %152 = arith.subf %142, %151 : vector<4x8x4xf32>
    %153 = math.exp %152 : vector<4x8x4xf32>
    %cst_39 = arith.constant dense<0.000000e+00> : vector<4x8xf32>
    %154 = vector.multi_reduction <add>, %150, %cst_39 [2] : vector<4x8x8xf32> to vector<4x8xf32>
    %155 = vector.shape_cast %154 : vector<4x8xf32> to vector<4x8x1xf32>
    %cst_40 = arith.constant dense<0.000000e+00> : vector<4x8xf32>
    %156 = vector.multi_reduction <add>, %153, %cst_40 [2] : vector<4x8x4xf32> to vector<4x8xf32>
    %157 = vector.shape_cast %156 : vector<4x8xf32> to vector<4x8x1xf32>
    %158 = arith.addf %155, %157 : vector<4x8x1xf32>
    %159 = tpu.reciprocal %158 {approx = true} : vector<4x8x1xf32> -> vector<4x8x1xf32>
    %160 = arith.truncf %150 : vector<4x8x8xf32> to vector<4x8x8xbf16>
    "tpu.trace_start"() <{level = 10 : i32, message = "hqk,hkd->hqd"}> : () -> ()
    %cst_41 = arith.constant dense<0.000000e+00> : vector<4x8x8xf32>
    %161 = tpu.matmul %160, %113, %cst_41 {dimension_numbers = #tpu.dot_dimension_numbers<[2], [1], [1], [2], [0, 0, 0, 1, 1, 2], [0], [0]>} : vector<4x8x8xbf16>, vector<4x8x8xbf16>, vector<4x8x8xf32> -> vector<4x8x8xf32>
    "tpu.trace_stop"() : () -> ()
    %162 = arith.truncf %153 : vector<4x8x4xf32> to vector<4x8x4xbf16>
    "tpu.trace_start"() <{level = 10 : i32, message = "hqk,hkd->hqd"}> : () -> ()
    %cst_42 = arith.constant dense<0.000000e+00> : vector<4x8x8xf32>
    %163 = tpu.matmul %162, %140, %cst_42 {dimension_numbers = #tpu.dot_dimension_numbers<[2], [1], [1], [2], [0, 0, 0, 1, 1, 2], [0], [0]>} : vector<4x8x4xbf16>, vector<4x4x8xbf16>, vector<4x8x8xf32> -> vector<4x8x8xf32>
    "tpu.trace_stop"() : () -> ()
    %164 = arith.addf %161, %163 : vector<4x8x8xf32>
    %165 = vector.broadcast %159 : vector<4x8x1xf32> to vector<4x8x8xf32>
    %166 = arith.mulf %164, %165 : vector<4x8x8xf32>
    %cst_43 = arith.constant 0.000000e+00 : f32
    %167 = vector.broadcast %cst_43 : f32 to vector<8x32xf32>
    %168 = vector.extract_strided_slice %166 {offsets = [0, 0, 0], sizes = [1, 8, 8], strides = [1, 1, 1]} : vector<4x8x8xf32> to vector<1x8x8xf32>
    %169 = vector.shape_cast %168 : vector<1x8x8xf32> to vector<8x8xf32>
    %170 = arith.truncf %169 : vector<8x8xf32> to vector<8x8xbf16>
    %c0_44 = arith.constant 0 : index
    %c0_45 = arith.constant 0 : index
    %171 = vector.load %arg10[%c0_44, %c0_45] : memref<32x32xbf16, #tpu.memory_space<vmem>>, vector<8x32xbf16>
    %cst_46 = arith.constant dense<0.000000e+00> : vector<8x32xf32>
    %172 = tpu.matmul %170, %171, %cst_46 {dimension_numbers = #tpu.dot_dimension_numbers<[1], [0], [0], [1], [0, 0, 1, 1], [], []>} : vector<8x8xbf16>, vector<8x32xbf16>, vector<8x32xf32> -> vector<8x32xf32>
    %173 = arith.addf %167, %172 : vector<8x32xf32>
    %174 = vector.extract_strided_slice %166 {offsets = [1, 0, 0], sizes = [1, 8, 8], strides = [1, 1, 1]} : vector<4x8x8xf32> to vector<1x8x8xf32>
    %175 = vector.shape_cast %174 : vector<1x8x8xf32> to vector<8x8xf32>
    %176 = arith.truncf %175 : vector<8x8xf32> to vector<8x8xbf16>
    %c8 = arith.constant 8 : index
    %c0_47 = arith.constant 0 : index
    %177 = vector.load %arg10[%c8, %c0_47] : memref<32x32xbf16, #tpu.memory_space<vmem>>, vector<8x32xbf16>
    %cst_48 = arith.constant dense<0.000000e+00> : vector<8x32xf32>
    %178 = tpu.matmul %176, %177, %cst_48 {dimension_numbers = #tpu.dot_dimension_numbers<[1], [0], [0], [1], [0, 0, 1, 1], [], []>} : vector<8x8xbf16>, vector<8x32xbf16>, vector<8x32xf32> -> vector<8x32xf32>
    %179 = arith.addf %173, %178 : vector<8x32xf32>
    %180 = vector.extract_strided_slice %166 {offsets = [2, 0, 0], sizes = [1, 8, 8], strides = [1, 1, 1]} : vector<4x8x8xf32> to vector<1x8x8xf32>
    %181 = vector.shape_cast %180 : vector<1x8x8xf32> to vector<8x8xf32>
    %182 = arith.truncf %181 : vector<8x8xf32> to vector<8x8xbf16>
    %c16 = arith.constant 16 : index
    %c0_49 = arith.constant 0 : index
    %183 = vector.load %arg10[%c16, %c0_49] : memref<32x32xbf16, #tpu.memory_space<vmem>>, vector<8x32xbf16>
    %cst_50 = arith.constant dense<0.000000e+00> : vector<8x32xf32>
    %184 = tpu.matmul %182, %183, %cst_50 {dimension_numbers = #tpu.dot_dimension_numbers<[1], [0], [0], [1], [0, 0, 1, 1], [], []>} : vector<8x8xbf16>, vector<8x32xbf16>, vector<8x32xf32> -> vector<8x32xf32>
    %185 = arith.addf %179, %184 : vector<8x32xf32>
    %186 = vector.extract_strided_slice %166 {offsets = [3, 0, 0], sizes = [1, 8, 8], strides = [1, 1, 1]} : vector<4x8x8xf32> to vector<1x8x8xf32>
    %187 = vector.shape_cast %186 : vector<1x8x8xf32> to vector<8x8xf32>
    %188 = arith.truncf %187 : vector<8x8xf32> to vector<8x8xbf16>
    %c24 = arith.constant 24 : index
    %c0_51 = arith.constant 0 : index
    %189 = vector.load %arg10[%c24, %c0_51] : memref<32x32xbf16, #tpu.memory_space<vmem>>, vector<8x32xbf16>
    %cst_52 = arith.constant dense<0.000000e+00> : vector<8x32xf32>
    %190 = tpu.matmul %188, %189, %cst_52 {dimension_numbers = #tpu.dot_dimension_numbers<[1], [0], [0], [1], [0, 0, 1, 1], [], []>} : vector<8x8xbf16>, vector<8x32xbf16>, vector<8x32xf32> -> vector<8x32xf32>
    %191 = arith.addf %185, %190 : vector<8x32xf32>
    %c0_53 = arith.constant 0 : index
    %c0_54 = arith.constant 0 : index
    %192 = vector.load %arg11[%c0_53, %c0_54] : memref<1x32xf32, #tpu.memory_space<vmem>>, vector<1x32xf32>
    %193 = vector.broadcast %192 : vector<1x32xf32> to vector<8x32xf32>
    %194 = arith.addf %191, %193 : vector<8x32xf32>
    "tpu.trace_start"() <{level = 10 : i32, message = "hqd,hkd->hqk"}> : () -> ()
    %cst_55 = arith.constant dense<0.000000e+00> : vector<4x4x8xf32>
    %195 = tpu.matmul %122, %104, %cst_55 {dimension_numbers = #tpu.dot_dimension_numbers<[2], [2], [1], [1], [0, 0, 0, 1, 1, 1], [0], [0]>} : vector<4x4x8xbf16>, vector<4x8x8xbf16>, vector<4x4x8xf32> -> vector<4x4x8xf32>
    %cst_56 = arith.constant dense<0.000000e+00> : vector<4x4x4xf32>
    %196 = tpu.matmul %122, %131, %cst_56 {dimension_numbers = #tpu.dot_dimension_numbers<[2], [2], [1], [1], [0, 0, 0, 1, 1, 1], [0], [0]>} : vector<4x4x8xbf16>, vector<4x4x8xbf16>, vector<4x4x4xf32> -> vector<4x4x4xf32>
    "tpu.trace_stop"() : () -> ()
    %cst_57 = arith.constant dense<0xFF800000> : vector<4x4xf32>
    %197 = vector.multi_reduction <maximumf>, %195, %cst_57 [2] : vector<4x4x8xf32> to vector<4x4xf32>
    %198 = vector.shape_cast %197 : vector<4x4xf32> to vector<4x4x1xf32>
    %cst_58 = arith.constant dense<0xFF800000> : vector<4x4xf32>
    %199 = vector.multi_reduction <maximumf>, %196, %cst_58 [2] : vector<4x4x4xf32> to vector<4x4xf32>
    %200 = vector.shape_cast %199 : vector<4x4xf32> to vector<4x4x1xf32>
    %201 = arith.maximumf %198, %200 : vector<4x4x1xf32>
    %202 = vector.broadcast %201 : vector<4x4x1xf32> to vector<4x4x8xf32>
    %203 = arith.subf %195, %202 : vector<4x4x8xf32>
    %204 = math.exp %203 : vector<4x4x8xf32>
    %205 = vector.broadcast %201 : vector<4x4x1xf32> to vector<4x4x4xf32>
    %206 = arith.subf %196, %205 : vector<4x4x4xf32>
    %207 = math.exp %206 : vector<4x4x4xf32>
    %cst_59 = arith.constant dense<0.000000e+00> : vector<4x4xf32>
    %208 = vector.multi_reduction <add>, %204, %cst_59 [2] : vector<4x4x8xf32> to vector<4x4xf32>
    %209 = vector.shape_cast %208 : vector<4x4xf32> to vector<4x4x1xf32>
    %cst_60 = arith.constant dense<0.000000e+00> : vector<4x4xf32>
    %210 = vector.multi_reduction <add>, %207, %cst_60 [2] : vector<4x4x4xf32> to vector<4x4xf32>
    %211 = vector.shape_cast %210 : vector<4x4xf32> to vector<4x4x1xf32>
    %212 = arith.addf %209, %211 : vector<4x4x1xf32>
    %213 = tpu.reciprocal %212 {approx = true} : vector<4x4x1xf32> -> vector<4x4x1xf32>
    %214 = arith.truncf %204 : vector<4x4x8xf32> to vector<4x4x8xbf16>
    "tpu.trace_start"() <{level = 10 : i32, message = "hqk,hkd->hqd"}> : () -> ()
    %cst_61 = arith.constant dense<0.000000e+00> : vector<4x4x8xf32>
    %215 = tpu.matmul %214, %113, %cst_61 {dimension_numbers = #tpu.dot_dimension_numbers<[2], [1], [1], [2], [0, 0, 0, 1, 1, 2], [0], [0]>} : vector<4x4x8xbf16>, vector<4x8x8xbf16>, vector<4x4x8xf32> -> vector<4x4x8xf32>
    "tpu.trace_stop"() : () -> ()
    %216 = arith.truncf %207 : vector<4x4x4xf32> to vector<4x4x4xbf16>
    "tpu.trace_start"() <{level = 10 : i32, message = "hqk,hkd->hqd"}> : () -> ()
    %cst_62 = arith.constant dense<0.000000e+00> : vector<4x4x8xf32>
    %217 = tpu.matmul %216, %140, %cst_62 {dimension_numbers = #tpu.dot_dimension_numbers<[2], [1], [1], [2], [0, 0, 0, 1, 1, 2], [0], [0]>} : vector<4x4x4xbf16>, vector<4x4x8xbf16>, vector<4x4x8xf32> -> vector<4x4x8xf32>
    "tpu.trace_stop"() : () -> ()
    %218 = arith.addf %215, %217 : vector<4x4x8xf32>
    %219 = vector.broadcast %213 : vector<4x4x1xf32> to vector<4x4x8xf32>
    %220 = arith.mulf %218, %219 : vector<4x4x8xf32>
    %cst_63 = arith.constant 0.000000e+00 : f32
    %221 = vector.broadcast %cst_63 : f32 to vector<4x32xf32>
    %222 = vector.extract_strided_slice %220 {offsets = [0, 0, 0], sizes = [1, 4, 8], strides = [1, 1, 1]} : vector<4x4x8xf32> to vector<1x4x8xf32>
    %223 = vector.shape_cast %222 : vector<1x4x8xf32> to vector<4x8xf32>
    %224 = arith.truncf %223 : vector<4x8xf32> to vector<4x8xbf16>
    %c0_64 = arith.constant 0 : index
    %c0_65 = arith.constant 0 : index
    %225 = vector.load %arg12[%c0_64, %c0_65] : memref<32x32xbf16, #tpu.memory_space<vmem>>, vector<8x32xbf16>
    %cst_66 = arith.constant dense<0.000000e+00> : vector<4x32xf32>
    %226 = tpu.matmul %224, %225, %cst_66 {dimension_numbers = #tpu.dot_dimension_numbers<[1], [0], [0], [1], [0, 0, 1, 1], [], []>} : vector<4x8xbf16>, vector<8x32xbf16>, vector<4x32xf32> -> vector<4x32xf32>
    %227 = arith.addf %221, %226 : vector<4x32xf32>
    %228 = vector.extract_strided_slice %220 {offsets = [1, 0, 0], sizes = [1, 4, 8], strides = [1, 1, 1]} : vector<4x4x8xf32> to vector<1x4x8xf32>
    %229 = vector.shape_cast %228 : vector<1x4x8xf32> to vector<4x8xf32>
    %230 = arith.truncf %229 : vector<4x8xf32> to vector<4x8xbf16>
    %c8_67 = arith.constant 8 : index
    %c0_68 = arith.constant 0 : index
    %231 = vector.load %arg12[%c8_67, %c0_68] : memref<32x32xbf16, #tpu.memory_space<vmem>>, vector<8x32xbf16>
    %cst_69 = arith.constant dense<0.000000e+00> : vector<4x32xf32>
    %232 = tpu.matmul %230, %231, %cst_69 {dimension_numbers = #tpu.dot_dimension_numbers<[1], [0], [0], [1], [0, 0, 1, 1], [], []>} : vector<4x8xbf16>, vector<8x32xbf16>, vector<4x32xf32> -> vector<4x32xf32>
    %233 = arith.addf %227, %232 : vector<4x32xf32>
    %234 = vector.extract_strided_slice %220 {offsets = [2, 0, 0], sizes = [1, 4, 8], strides = [1, 1, 1]} : vector<4x4x8xf32> to vector<1x4x8xf32>
    %235 = vector.shape_cast %234 : vector<1x4x8xf32> to vector<4x8xf32>
    %236 = arith.truncf %235 : vector<4x8xf32> to vector<4x8xbf16>
    %c16_70 = arith.constant 16 : index
    %c0_71 = arith.constant 0 : index
    %237 = vector.load %arg12[%c16_70, %c0_71] : memref<32x32xbf16, #tpu.memory_space<vmem>>, vector<8x32xbf16>
    %cst_72 = arith.constant dense<0.000000e+00> : vector<4x32xf32>
    %238 = tpu.matmul %236, %237, %cst_72 {dimension_numbers = #tpu.dot_dimension_numbers<[1], [0], [0], [1], [0, 0, 1, 1], [], []>} : vector<4x8xbf16>, vector<8x32xbf16>, vector<4x32xf32> -> vector<4x32xf32>
    %239 = arith.addf %233, %238 : vector<4x32xf32>
    %240 = vector.extract_strided_slice %220 {offsets = [3, 0, 0], sizes = [1, 4, 8], strides = [1, 1, 1]} : vector<4x4x8xf32> to vector<1x4x8xf32>
    %241 = vector.shape_cast %240 : vector<1x4x8xf32> to vector<4x8xf32>
    %242 = arith.truncf %241 : vector<4x8xf32> to vector<4x8xbf16>
    %c24_73 = arith.constant 24 : index
    %c0_74 = arith.constant 0 : index
    %243 = vector.load %arg12[%c24_73, %c0_74] : memref<32x32xbf16, #tpu.memory_space<vmem>>, vector<8x32xbf16>
    %cst_75 = arith.constant dense<0.000000e+00> : vector<4x32xf32>
    %244 = tpu.matmul %242, %243, %cst_75 {dimension_numbers = #tpu.dot_dimension_numbers<[1], [0], [0], [1], [0, 0, 1, 1], [], []>} : vector<4x8xbf16>, vector<8x32xbf16>, vector<4x32xf32> -> vector<4x32xf32>
    %245 = arith.addf %239, %244 : vector<4x32xf32>
    %c0_76 = arith.constant 0 : index
    %c0_77 = arith.constant 0 : index
    %246 = vector.load %arg13[%c0_76, %c0_77] : memref<1x32xf32, #tpu.memory_space<vmem>>, vector<1x32xf32>
    %247 = vector.broadcast %246 : vector<1x32xf32> to vector<4x32xf32>
    %248 = arith.addf %245, %247 : vector<4x32xf32>
    %249 = vector.broadcast %19 : vector<1x32xf32> to vector<8x32xf32>
    %250 = arith.mulf %249, %194 : vector<8x32xf32>
    %251 = arith.addf %1, %250 : vector<8x32xf32>
    %252 = vector.broadcast %25 : vector<1x32xf32> to vector<4x32xf32>
    %253 = arith.mulf %252, %248 : vector<4x32xf32>
    %254 = arith.addf %3, %253 : vector<4x32xf32>
    %cst_78 = arith.constant dense<0.000000e+00> : vector<8xf32>
    %255 = vector.multi_reduction <add>, %251, %cst_78 [1] : vector<8x32xf32> to vector<8xf32>
    %256 = vector.shape_cast %255 : vector<8xf32> to vector<8x1xf32>
    %cst_79 = arith.constant 3.200000e+01 : f32
    %257 = vector.broadcast %cst_79 : f32 to vector<8x1xf32>
    %258 = arith.divf %256, %257 : vector<8x1xf32>
    %259 = vector.broadcast %258 : vector<8x1xf32> to vector<8x32xf32>
    %260 = arith.subf %251, %259 : vector<8x32xf32>
    %261 = arith.mulf %260, %260 : vector<8x32xf32>
    %cst_80 = arith.constant dense<0.000000e+00> : vector<8xf32>
    %262 = vector.multi_reduction <add>, %261, %cst_80 [1] : vector<8x32xf32> to vector<8xf32>
    %263 = vector.shape_cast %262 : vector<8xf32> to vector<8x1xf32>
    %cst_81 = arith.constant 3.200000e+01 : f32
    %264 = vector.broadcast %cst_81 : f32 to vector<8x1xf32>
    %265 = arith.divf %263, %264 : vector<8x1xf32>
    %cst_82 = arith.constant 9.99999997E-7 : f32
    %266 = vector.broadcast %cst_82 : f32 to vector<8x1xf32>
    %267 = arith.addf %265, %266 : vector<8x1xf32>
    %268 = math.rsqrt %267 : vector<8x1xf32>
    %269 = vector.broadcast %268 : vector<8x1xf32> to vector<8x32xf32>
    %270 = arith.mulf %260, %269 : vector<8x32xf32>
    %cst_83 = arith.constant 1.000000e+00 : f32
    %271 = vector.broadcast %cst_83 : f32 to vector<1x32xf32>
    %272 = arith.addf %271, %21 : vector<1x32xf32>
    %273 = vector.broadcast %272 : vector<1x32xf32> to vector<8x32xf32>
    %274 = arith.mulf %270, %273 : vector<8x32xf32>
    %275 = vector.broadcast %20 : vector<1x32xf32> to vector<8x32xf32>
    %276 = arith.addf %274, %275 : vector<8x32xf32>
    %277 = arith.truncf %276 : vector<8x32xf32> to vector<8x32xbf16>
    %c0_84 = arith.constant 0 : index
    %c0_85 = arith.constant 0 : index
    %278 = vector.load %arg14[%c0_84, %c0_85] : memref<32x128xbf16, #tpu.memory_space<vmem>>, vector<32x128xbf16>
    %cst_86 = arith.constant dense<0.000000e+00> : vector<8x128xf32>
    %279 = tpu.matmul %277, %278, %cst_86 {dimension_numbers = #tpu.dot_dimension_numbers<[1], [0], [0], [1], [0, 0, 1, 1], [], []>} : vector<8x32xbf16>, vector<32x128xbf16>, vector<8x128xf32> -> vector<8x128xf32>
    %c0_87 = arith.constant 0 : index
    %c0_88 = arith.constant 0 : index
    %280 = vector.load %arg15[%c0_87, %c0_88] : memref<1x128xf32, #tpu.memory_space<vmem>>, vector<1x128xf32>
    %281 = vector.broadcast %280 : vector<1x128xf32> to vector<8x128xf32>
    %282 = arith.addf %279, %281 : vector<8x128xf32>
    %cst_89 = arith.constant 5.000000e-01 : f32
    %283 = vector.broadcast %cst_89 : f32 to vector<8x128xf32>
    %284 = arith.mulf %283, %282 : vector<8x128xf32>
    %cst_90 = arith.constant 4.471500e-02 : f32
    %285 = vector.broadcast %cst_90 : f32 to vector<8x128xf32>
    %286 = arith.mulf %285, %282 : vector<8x128xf32>
    %287 = arith.mulf %286, %282 : vector<8x128xf32>
    %288 = arith.mulf %287, %282 : vector<8x128xf32>
    %289 = arith.addf %282, %288 : vector<8x128xf32>
    %cst_91 = arith.constant 0.797884583 : f32
    %290 = vector.broadcast %cst_91 : f32 to vector<8x128xf32>
    %291 = arith.mulf %290, %289 : vector<8x128xf32>
    %292 = math.tanh %291 : vector<8x128xf32>
    %cst_92 = arith.constant 1.000000e+00 : f32
    %293 = vector.broadcast %cst_92 : f32 to vector<8x128xf32>
    %294 = arith.addf %293, %292 : vector<8x128xf32>
    %295 = arith.mulf %284, %294 : vector<8x128xf32>
    %296 = arith.truncf %295 : vector<8x128xf32> to vector<8x128xbf16>
    %c0_93 = arith.constant 0 : index
    %c0_94 = arith.constant 0 : index
    %297 = vector.load %arg16[%c0_93, %c0_94] : memref<128x32xbf16, #tpu.memory_space<vmem>>, vector<128x32xbf16>
    %cst_95 = arith.constant dense<0.000000e+00> : vector<8x32xf32>
    %298 = tpu.matmul %296, %297, %cst_95 {dimension_numbers = #tpu.dot_dimension_numbers<[1], [0], [0], [1], [0, 0, 1, 1], [], []>} : vector<8x128xbf16>, vector<128x32xbf16>, vector<8x32xf32> -> vector<8x32xf32>
    %c0_96 = arith.constant 0 : index
    %c0_97 = arith.constant 0 : index
    %299 = vector.load %arg17[%c0_96, %c0_97] : memref<1x32xf32, #tpu.memory_space<vmem>>, vector<1x32xf32>
    %300 = vector.broadcast %299 : vector<1x32xf32> to vector<8x32xf32>
    %301 = arith.addf %298, %300 : vector<8x32xf32>
    %302 = vector.broadcast %22 : vector<1x32xf32> to vector<8x32xf32>
    %303 = arith.mulf %302, %301 : vector<8x32xf32>
    %304 = arith.addf %251, %303 : vector<8x32xf32>
    %cst_98 = arith.constant dense<0.000000e+00> : vector<4xf32>
    %305 = vector.multi_reduction <add>, %254, %cst_98 [1] : vector<4x32xf32> to vector<4xf32>
    %306 = vector.shape_cast %305 : vector<4xf32> to vector<4x1xf32>
    %cst_99 = arith.constant 3.200000e+01 : f32
    %307 = vector.broadcast %cst_99 : f32 to vector<4x1xf32>
    %308 = arith.divf %306, %307 : vector<4x1xf32>
    %309 = vector.broadcast %308 : vector<4x1xf32> to vector<4x32xf32>
    %310 = arith.subf %254, %309 : vector<4x32xf32>
    %311 = arith.mulf %310, %310 : vector<4x32xf32>
    %cst_100 = arith.constant dense<0.000000e+00> : vector<4xf32>
    %312 = vector.multi_reduction <add>, %311, %cst_100 [1] : vector<4x32xf32> to vector<4xf32>
    %313 = vector.shape_cast %312 : vector<4xf32> to vector<4x1xf32>
    %cst_101 = arith.constant 3.200000e+01 : f32
    %314 = vector.broadcast %cst_101 : f32 to vector<4x1xf32>
    %315 = arith.divf %313, %314 : vector<4x1xf32>
    %cst_102 = arith.constant 9.99999997E-7 : f32
    %316 = vector.broadcast %cst_102 : f32 to vector<4x1xf32>
    %317 = arith.addf %315, %316 : vector<4x1xf32>
    %318 = math.rsqrt %317 : vector<4x1xf32>
    %319 = vector.broadcast %318 : vector<4x1xf32> to vector<4x32xf32>
    %320 = arith.mulf %310, %319 : vector<4x32xf32>
    %cst_103 = arith.constant 1.000000e+00 : f32
    %321 = vector.broadcast %cst_103 : f32 to vector<1x32xf32>
    %322 = arith.addf %321, %27 : vector<1x32xf32>
    %323 = vector.broadcast %322 : vector<1x32xf32> to vector<4x32xf32>
    %324 = arith.mulf %320, %323 : vector<4x32xf32>
    %325 = vector.broadcast %26 : vector<1x32xf32> to vector<4x32xf32>
    %326 = arith.addf %324, %325 : vector<4x32xf32>
    %327 = arith.truncf %326 : vector<4x32xf32> to vector<4x32xbf16>
    %c0_104 = arith.constant 0 : index
    %c0_105 = arith.constant 0 : index
    %328 = vector.load %arg18[%c0_104, %c0_105] : memref<32x128xbf16, #tpu.memory_space<vmem>>, vector<32x128xbf16>
    %cst_106 = arith.constant dense<0.000000e+00> : vector<4x128xf32>
    %329 = tpu.matmul %327, %328, %cst_106 {dimension_numbers = #tpu.dot_dimension_numbers<[1], [0], [0], [1], [0, 0, 1, 1], [], []>} : vector<4x32xbf16>, vector<32x128xbf16>, vector<4x128xf32> -> vector<4x128xf32>
    %c0_107 = arith.constant 0 : index
    %c0_108 = arith.constant 0 : index
    %330 = vector.load %arg19[%c0_107, %c0_108] : memref<1x128xf32, #tpu.memory_space<vmem>>, vector<1x128xf32>
    %331 = vector.broadcast %330 : vector<1x128xf32> to vector<4x128xf32>
    %332 = arith.addf %329, %331 : vector<4x128xf32>
    %cst_109 = arith.constant 5.000000e-01 : f32
    %333 = vector.broadcast %cst_109 : f32 to vector<4x128xf32>
    %334 = arith.mulf %333, %332 : vector<4x128xf32>
    %cst_110 = arith.constant 4.471500e-02 : f32
    %335 = vector.broadcast %cst_110 : f32 to vector<4x128xf32>
    %336 = arith.mulf %335, %332 : vector<4x128xf32>
    %337 = arith.mulf %336, %332 : vector<4x128xf32>
    %338 = arith.mulf %337, %332 : vector<4x128xf32>
    %339 = arith.addf %332, %338 : vector<4x128xf32>
    %cst_111 = arith.constant 0.797884583 : f32
    %340 = vector.broadcast %cst_111 : f32 to vector<4x128xf32>
    %341 = arith.mulf %340, %339 : vector<4x128xf32>
    %342 = math.tanh %341 : vector<4x128xf32>
    %cst_112 = arith.constant 1.000000e+00 : f32
    %343 = vector.broadcast %cst_112 : f32 to vector<4x128xf32>
    %344 = arith.addf %343, %342 : vector<4x128xf32>
    %345 = arith.mulf %334, %344 : vector<4x128xf32>
    %346 = arith.truncf %345 : vector<4x128xf32> to vector<4x128xbf16>
    %c0_113 = arith.constant 0 : index
    %c0_114 = arith.constant 0 : index
    %347 = vector.load %arg20[%c0_113, %c0_114] : memref<128x32xbf16, #tpu.memory_space<vmem>>, vector<128x32xbf16>
    %cst_115 = arith.constant dense<0.000000e+00> : vector<4x32xf32>
    %348 = tpu.matmul %346, %347, %cst_115 {dimension_numbers = #tpu.dot_dimension_numbers<[1], [0], [0], [1], [0, 0, 1, 1], [], []>} : vector<4x128xbf16>, vector<128x32xbf16>, vector<4x32xf32> -> vector<4x32xf32>
    %c0_116 = arith.constant 0 : index
    %c0_117 = arith.constant 0 : index
    %349 = vector.load %arg21[%c0_116, %c0_117] : memref<1x32xf32, #tpu.memory_space<vmem>>, vector<1x32xf32>
    %350 = vector.broadcast %349 : vector<1x32xf32> to vector<4x32xf32>
    %351 = arith.addf %348, %350 : vector<4x32xf32>
    %352 = vector.broadcast %28 : vector<1x32xf32> to vector<4x32xf32>
    %353 = arith.mulf %352, %351 : vector<4x32xf32>
    %354 = arith.addf %254, %353 : vector<4x32xf32>
    %c0_118 = arith.constant 0 : index
    %c0_119 = arith.constant 0 : index
    %c0_120 = arith.constant 0 : index
    %355 = vector.load %arg22[%c0_118, %c0_119, %c0_120] : memref<1x8x32xf32, #tpu.memory_space<vmem>>, vector<1x8x32xf32>
    %356 = vector.shape_cast %355 : vector<1x8x32xf32> to vector<8x32xf32>
    %357 = vector.shape_cast %304 : vector<8x32xf32> to vector<1x8x32xf32>
    tpu.vector_store %arg22[%c0_118, %c0_119, %c0_120], %357 {strides = array<i32>} : memref<1x8x32xf32, #tpu.memory_space<vmem>>, vector<1x8x32xf32>,
    %c0_121 = arith.constant 0 : index
    %c0_122 = arith.constant 0 : index
    %c0_123 = arith.constant 0 : index
    %358 = vector.load %arg23[%c0_121, %c0_122, %c0_123] : memref<1x4x32xf32, #tpu.memory_space<vmem>>, vector<1x4x32xf32>
    %359 = vector.shape_cast %358 : vector<1x4x32xf32> to vector<4x32xf32>
    %360 = vector.shape_cast %354 : vector<4x32xf32> to vector<1x4x32xf32>
    tpu.vector_store %arg23[%c0_121, %c0_122, %c0_123], %360 {strides = array<i32>} : memref<1x4x32xf32, #tpu.memory_space<vmem>>, vector<1x4x32xf32>,
    return
  }
  func.func @transform_0(%arg0: i32) -> (i32, i32, i32) {
    %c0_i32 = arith.constant 0 : i32
    %c0_i32_0 = arith.constant 0 : i32
    %c0_i32_1 = arith.constant 0 : i32
    return %arg0, %c0_i32, %c0_i32_0 : i32, i32, i32
  }
  func.func @transform_1(%arg0: i32) -> (i32, i32, i32) {
    %c0_i32 = arith.constant 0 : i32
    %c0_i32_0 = arith.constant 0 : i32
    %c0_i32_1 = arith.constant 0 : i32
    return %arg0, %c0_i32, %c0_i32_0 : i32, i32, i32
  }
  func.func @transform_2(%arg0: i32) -> (i32, i32, i32) {
    %c0_i32 = arith.constant 0 : i32
    %c0_i32_0 = arith.constant 0 : i32
    %c0_i32_1 = arith.constant 0 : i32
    return %arg0, %c0_i32, %c0_i32_0 : i32, i32, i32
  }
  func.func @transform_3(%arg0: i32) -> (i32, i32) {
    %c0_i32 = arith.constant 0 : i32
    %c0_i32_0 = arith.constant 0 : i32
    %c0_i32_1 = arith.constant 0 : i32
    return %c0_i32, %c0_i32_0 : i32, i32
  }
  func.func @transform_4(%arg0: i32) -> (i32, i32) {
    %c0_i32 = arith.constant 0 : i32
    %c0_i32_0 = arith.constant 0 : i32
    %c0_i32_1 = arith.constant 0 : i32
    return %c0_i32, %c0_i32_0 : i32, i32
  }
  func.func @transform_5(%arg0: i32) -> (i32, i32) {
    %c0_i32 = arith.constant 0 : i32
    %c0_i32_0 = arith.constant 0 : i32
    %c0_i32_1 = arith.constant 0 : i32
    return %c0_i32, %c0_i32_0 : i32, i32
  }
  func.func @transform_6(%arg0: i32) -> (i32, i32) {
    %c0_i32 = arith.constant 0 : i32
    %c0_i32_0 = arith.constant 0 : i32
    %c0_i32_1 = arith.constant 0 : i32
    return %c0_i32, %c0_i32_0 : i32, i32
  }
  func.func @transform_7(%arg0: i32) -> (i32, i32) {
    %c0_i32 = arith.constant 0 : i32
    %c0_i32_0 = arith.constant 0 : i32
    %c0_i32_1 = arith.constant 0 : i32
    return %c0_i32, %c0_i32_0 : i32, i32
  }
  func.func @transform_8(%arg0: i32) -> (i32, i32) {
    %c0_i32 = arith.constant 0 : i32
    %c0_i32_0 = arith.constant 0 : i32
    %c0_i32_1 = arith.constant 0 : i32
    return %c0_i32, %c0_i32_0 : i32, i32
  }
  func.func @transform_9(%arg0: i32) -> (i32, i32) {
    %c0_i32 = arith.constant 0 : i32
    %c0_i32_0 = arith.constant 0 : i32
    %c0_i32_1 = arith.constant 0 : i32
    return %c0_i32, %c0_i32_0 : i32, i32
  }
  func.func @transform_10(%arg0: i32) -> (i32, i32) {
    %c0_i32 = arith.constant 0 : i32
    %c0_i32_0 = arith.constant 0 : i32
    %c0_i32_1 = arith.constant 0 : i32
    return %c0_i32, %c0_i32_0 : i32, i32
  }
  func.func @transform_11(%arg0: i32) -> (i32, i32) {
    %c0_i32 = arith.constant 0 : i32
    %c0_i32_0 = arith.constant 0 : i32
    %c0_i32_1 = arith.constant 0 : i32
    return %c0_i32, %c0_i32_0 : i32, i32
  }
  func.func @transform_12(%arg0: i32) -> (i32, i32) {
    %c0_i32 = arith.constant 0 : i32
    %c0_i32_0 = arith.constant 0 : i32
    %c0_i32_1 = arith.constant 0 : i32
    return %c0_i32, %c0_i32_0 : i32, i32
  }
  func.func @transform_13(%arg0: i32) -> (i32, i32) {
    %c0_i32 = arith.constant 0 : i32
    %c0_i32_0 = arith.constant 0 : i32
    %c0_i32_1 = arith.constant 0 : i32
    return %c0_i32, %c0_i32_0 : i32, i32
  }
  func.func @transform_14(%arg0: i32) -> (i32, i32) {
    %c0_i32 = arith.constant 0 : i32
    %c0_i32_0 = arith.constant 0 : i32
    %c0_i32_1 = arith.constant 0 : i32
    return %c0_i32, %c0_i32_0 : i32, i32
  }
  func.func @transform_15(%arg0: i32) -> (i32, i32) {
    %c0_i32 = arith.constant 0 : i32
    %c0_i32_0 = arith.constant 0 : i32
    %c0_i32_1 = arith.constant 0 : i32
    return %c0_i32, %c0_i32_0 : i32, i32
  }
  func.func @transform_16(%arg0: i32) -> (i32, i32) {
    %c0_i32 = arith.constant 0 : i32
    %c0_i32_0 = arith.constant 0 : i32
    %c0_i32_1 = arith.constant 0 : i32
    return %c0_i32, %c0_i32_0 : i32, i32
  }
  func.func @transform_17(%arg0: i32) -> (i32, i32) {
    %c0_i32 = arith.constant 0 : i32
    %c0_i32_0 = arith.constant 0 : i32
    %c0_i32_1 = arith.constant 0 : i32
    return %c0_i32, %c0_i32_0 : i32, i32
  }
  func.func @transform_18(%arg0: i32) -> (i32, i32) {
    %c0_i32 = arith.constant 0 : i32
    %c0_i32_0 = arith.constant 0 : i32
    %c0_i32_1 = arith.constant 0 : i32
    return %c0_i32, %c0_i32_0 : i32, i32
  }
  func.func @transform_19(%arg0: i32) -> (i32, i32) {
    %c0_i32 = arith.constant 0 : i32
    %c0_i32_0 = arith.constant 0 : i32
    %c0_i32_1 = arith.constant 0 : i32
    return %c0_i32, %c0_i32_0 : i32, i32
  }
  func.func @transform_20(%arg0: i32) -> (i32, i32) {
    %c0_i32 = arith.constant 0 : i32
    %c0_i32_0 = arith.constant 0 : i32
    %c0_i32_1 = arith.constant 0 : i32
    return %c0_i32, %c0_i32_0 : i32, i32
  }
  func.func @transform_21(%arg0: i32) -> (i32, i32, i32) {
    %c0_i32 = arith.constant 0 : i32
    %c0_i32_0 = arith.constant 0 : i32
    %c0_i32_1 = arith.constant 0 : i32
    return %arg0, %c0_i32, %c0_i32_0 : i32, i32, i32
  }
  func.func @transform_22(%arg0: i32) -> (i32, i32, i32) {
    %c0_i32 = arith.constant 0 : i32
    %c0_i32_0 = arith.constant 0 : i32
    %c0_i32_1 = arith.constant 0 : i32
    return %arg0, %c0_i32, %c0_i32_0 : i32, i32, i32
  }
}

</mosaic_0001>

<bundles_post_ra>
// kernel: tpu_custom_call.1
= control target key start
LH: loop header
LB: loop body
LE: loop exit
PB: predicated region body
PF: predicated region fallthrough
CT: control target
= control target key end

     0   :  { %s3979_s0 = inlined_call_operand.vmem [shape: f32[2,8,32], index: 0, kind: input, shape index: {}]   ;;  %s3980_s1 = inlined_call_operand.hbm [shape: f32[2,4,32], index: 1, kind: input, shape index: {}]   ;;  %s3981_s2 = inlined_call_operand.hbm [shape: f32[2,1,32], index: 2, kind: input, shape index: {}]   ;;  %s3982_s3 = inlined_call_operand.vmem [shape: bf16[32,384], index: 3, kind: input, shape index: {}]   ;;  %s3983_s4 = inlined_call_operand.vmem [shape: f32[1,384], index: 4, kind: input, shape index: {}]   ;;  %s3984_s5 = inlined_call_operand.vmem [shape: bf16[32,96], index: 5, kind: input, shape index: {}]   ;;  %s3985_s6 = inlined_call_operand.vmem [shape: f32[1,96], index: 6, kind: input, shape index: {}]   ;;  %s3986_s7 = inlined_call_operand.vmem [shape: bf16[32,96], index: 7, kind: input, shape index: {}]   ;;  %s3987_s8 = inlined_call_operand.vmem [shape: f32[1,96], index: 8, kind: input, shape index: {}]   ;;  %s3988_s9 = inlined_call_operand.vmem [shape: bf16[32,32], index: 9, kind: input, shape index: {}]   ;;  %s3989_s10 = inlined_call_operand.vmem [shape: f32[1,32], index: 10, kind: input, shape index: {}]   ;;  %s3990_s11 = inlined_call_operand.vmem [shape: bf16[32,32], index: 11, kind: input, shape index: {}]   ;;  %s3991_s12 = inlined_call_operand.vmem [shape: f32[1,32], index: 12, kind: input, shape index: {}]   ;;  %s3992_s13 = inlined_call_operand.vmem [shape: bf16[32,128], index: 13, kind: input, shape index: {}]   ;;  %s3993_s14 = inlined_call_operand.vmem [shape: f32[1,128], index: 14, kind: input, shape index: {}]   ;;  %s3994_s15 = inlined_call_operand.vmem [shape: bf16[128,32], index: 15, kind: input, shape index: {}]   ;;  %s3995_s16 = inlined_call_operand.vmem [shape: f32[1,32], index: 16, kind: input, shape index: {}]   ;;  %s3996_s17 = inlined_call_operand.hbm [shape: bf16[32,128], index: 17, kind: input, shape index: {}]   ;;  %s3997_s18 = inlined_call_operand.vmem [shape: f32[1,128], index: 18, kind: input, shape index: {}]   ;;  %s3998_s19 = inlined_call_operand.vmem [shape: bf16[128,32], index: 19, kind: input, shape index: {}]   ;;  %s3999_s20 = inlined_call_operand.vmem [shape: f32[1,32], index: 20, kind: input, shape index: {}]   ;;  %s4000_s21 = inlined_call_operand.hbm [shape: f32[2,8,32], index: 21, kind: output, shape index: {0}]   ;;  %s4001_s22 = inlined_call_operand.hbm [shape: f32[2,4,32], index: 22, kind: output, shape index: {1}]  }
   0x1   :  { %4022 = sst [smem:[#allocation23_spill]] %s3979_s0 }
   0x2   :  { %4023 = sst [smem:[#allocation24_spill]] %s3980_s1 }
   0x3   :  { %4024 = sst [smem:[#allocation25_spill]] %s3981_s2 }
   0x4   :  { %4025 = sst [smem:[#allocation26_spill]] %s3982_s3 }
   0x5   :  { %4026 = sst [smem:[#allocation27_spill]] %s3983_s4 }
   0x6   :  { %4027 = sst [smem:[#allocation28_spill]] %s3984_s5 }
   0x7   :  { %4028 = sst [smem:[#allocation29_spill]] %s3985_s6 }
   0x8   :  { %4029 = sst [smem:[#allocation30_spill]] %s3986_s7 }
   0x9   :  { %4030 = sst [smem:[#allocation31_spill]] %s3993_s14 }
   0xa   :  { %4031 = sst [smem:[#allocation32_spill]] %s3994_s15 }
   0xb   :  { %4032 = sst [smem:[#allocation33_spill]] %s3995_s16 }
   0xc   :  { %4033 = sst [smem:[#allocation34_spill]] %s3996_s17 }
   0xd   :  { %4034 = sst [smem:[#allocation35_spill]] %s3997_s18 }
   0xe   :  { %4035 = sst [smem:[#allocation36_spill]] %s3998_s19 }
   0xf   :  { %4036 = sst [smem:[#allocation37_spill]] %s3999_s20 }
  0x10   :  { %4037 = sst [smem:[#allocation38_spill]] %s4000_s21 }
  0x11   :  { %4038 = sst [smem:[#allocation39_spill]] %s4001_s22 }
  0x12   :  { %28 = vsyncpa [#allocation3], 0 }
  0x13   :  { %30 = vsyncpa [#allocation3 + $0x1], 0 }
  0x14   :  { %31 = vsyncpa [#allocation6], 0 }
  0x15   :  { %33 = vsyncpa [#allocation6 + $0x1], 0 }
  0x16   :  { %34 = vsyncpa [#allocation4], 0 }
  0x17   :  { %36 = vsyncpa [#allocation4 + $0x1], 0 }
  0x18   :  { %37 = vsyncpa [#allocation10], 0 }
  0x19   :  { %39 = vsyncpa [#allocation10 + $0x1], 0  ;;  %s3247_s3 = smov 0   ;;  %s3249_s28 = smov 0  }
  0x1a   :  { %s3251_s29 = smov 0   ;;  %s3253_s30 = smov 0  }
  0x1b LB: > { %4039 = sst [smem:[#allocation16_spill]] %s3108_s3  ;;  %s3271_s1 = sadd.s32 4294967295, %s3120_s30   ;;  %s3120_s30 = sphi %s3253_s30, %s4078_s30   ;;  %s3116_s29 = sphi %s3251_s29, %s4080_s29   ;;  %s3112_s28 = sphi %s3249_s28, %s4082_s28   ;;  %s3108_s3 = sphi %s3247_s3, %s4081_s3  }
  0x1c   : > { %4040 = sst [smem:[#allocation17_spill]] %s3116_s29  ;;  %p2556_p0 = scmp.ge.s32.totalorder %s3120_s30, 1 }
  0x1d   : > { %4041 = sst [smem:[#allocation18_spill]] %s3120_s30  ;;  %p92_p1 = scmp.eq.s32.totalorder %s3271_s1, 0 }
  0x1e   : > { %s4042_s17 = sld [smem:[#allocation34_spill]]  ;;  %p558_p2 = scmp.lt.s32.totalorder %s3120_s30, 3 }
  0x1f   : > { %s3122_s24 = smov [#allocation7]   ;;  %s3123_s25 = smov 64  }
  0x20   : > { %p3276_p3 = pnand %p2556_p0, %p558_p2  ;;  %s613_s6 = sshll.u32 %s3122_s24, 4  ;;  %s614_s6 = int_to_ptr.vmem [resolvable:$true] %s613_s6 }
  0x21   : > { %s3124_s26 = smov 4   ;;  %s2555_s2 = sadd.s32 4294967294, %s3120_s30  }
  0x22   : > { %p2783_p4 = pneg %p3276_p3  ;;  %s3287_s27 = sadd.s32 1, %s3120_s30  }
  0x23   : > { %4044 = sst [smem:[#allocation19_spill]] %s3287_s27  ;;  %s78_s4 = sadd.s32 1, %s3116_s29 }
  0x24   : > { %s611_s23 = sshll.u32 %s4042_s17, 4  ;;  %p2784_p6 = pnand %p2783_p4, %p92_p1  ;;  %s612_s23 = int_to_ptr.hbm [resolvable:$true] %s611_s23 }
  0x25   : > { %s75_s0 = ssub.s32 %s3120_s30, %s3287_s27  ;;  %p85_p7 = scmp.ne.s32.totalorder %s3116_s29, %s3112_s28 }
  0x26   : > { %2786 = dma.hbm_to_vmem [thread:$0]  (!%p2784_p6), %s612_s23, 256, %s614_s6, [#allocation6], %s3123_s25, %s3123_s25, %s3124_s26  }
  0x27   : > { %p76_p8 = scmp.eq.s32.totalorder %s75_s0, 0  ;;  %p86_p9 = scmp.eq.s32.totalorder %s3120_s30, 0 }
  0x28   : > { %p91_p10 = scmp.ne.s32.totalorder %s3112_s28, %s3108_s3  ;;  %p519_p11 = scmp.eq.s32.totalorder %s3271_s1, 1 }
  0x29   : > { %s3299_s24 = scalar_select %p76_p8, %s3116_s29, %s78_s4  }
  0x2a   : > { %p3301_p12 = por %p86_p9, %p85_p7  ;;  %p3307_p13 = por %p92_p1, %p91_p10 }
  0x2b   : > { %4045 = sst [smem:[#allocation20_spill]] %s3299_s24  ;;  %p3311_p0 = por %p519_p11, %p85_p7 }
  0x2c   : > { %p525_p2 = scmp.eq.s32.totalorder %s2555_s2, 1  ;;  %p2802_p4 = scmp.lt.s32.totalorder %s3120_s30, 2 }
  0x2d   : > { %s4048_s6 = scalar_select %p3311_p0, 1, 0 }
  0x2e   : > { %s3317_s25 = sand.u32 1, %s3116_s29   ;;  %p3319_p6 = por %p525_p2, %p91_p10 }
  0x2f   : > { %4049 = sst [smem:[#allocation21_spill]] %s4048_s6  ;;  %s2559_s4 = sshll.u32 %s3317_s25, 2 }
  0x30   : > { %s4050_s26 = scalar_select %p3319_p6, 1, 0 }
  0x31   : > { %s2560_s0 = sshll.u32 %s3120_s30, 2  ;;  %s4052_s3 = sld [smem:[#allocation24_spill]] }
  0x32   : > { %4051 = sst [smem:[#allocation22_spill]] %s4050_s26  ;;  %s647_s16 = scalar_lea.vmem [#allocation2], %s2559_s4 }
  0x33   : > { %s655_s18 = sshll.u32 %s647_s16, 4  ;;  %p3330_p7 = pnand %p2802_p4, %p3301_p12  ;;  %s656_s18 = int_to_ptr.vmem [resolvable:$true] %s655_s18 }
  0x34   : > { %s662_s29 = sand.u32 1, %s3120_s30   ;;  %s4055_s14 = sld [smem:[#allocation25_spill]] }
  0x35   : > { %s644_s15 = scalar_lea.sflag [#allocation3], %s3317_s25  ;;  %p2958_p9 = pneg %p3330_p7 }
  0x37   : > { %s4053_s22 = smov %s4052_s3  ;;  %s651_s21 = scalar_lea.hbm %s4052_s3, %s2560_s0 }
  0x38   : > { %s653_s20 = sshll.u32 %s651_s21, 4  ;;  %s2961_s3 = scalar_lea.hbm %s4053_s22, 8  ;;  %s654_s20 = int_to_ptr.hbm [resolvable:$true] %s653_s20 }
  0x39   : > { %s2954_s27 = sshra.s32 %s654_s20, 4  ;;  %s2955_s27 = int_to_ptr.hbm [resolvable:$true] %s2954_s27 }
  0x3a   : > { %s668_s19 = scalar_lea.hbm %s4055_s14, %s3120_s30  ;;  %s2956_s21 = scalar_lea.hbm %s2955_s27, 4 }
  0x3b   : > { %p2957_p8 = scmp.ne.s32.totalorder %s2955_s27, %s2956_s21  ;;  %p2962_p12 = scmp.lt.s32.totalorder %s2955_s27, %s4053_s22 }
  0x3c   : > { %p2963_p2 = scmp.lt.s32.totalorder %s2961_s3, %s2956_s21 }
  0x3d   : > { %p2959_p10 = pnand %p2958_p9, %p2957_p8 }
  0x3e   : > { %p2964_p4 = por %p2963_p2, %p2962_p12 }
  0x3f   : > { %p2960_p11 = pneg %p2959_p10 }
  0x41   : > { %p2965_p5 = pnand %p2964_p4, %p2960_p11 }
  0x43   : > { %2968 = shalt.err (!%p2965_p5)
}
  0x44   : > { %2790 = dma.hbm_to_vmem [thread:$0]  (!%p3330_p7), %s654_s20, 64, %s656_s18, %s644_s15  }
  0x45   : > { %s670_s6 = sshll.u32 %s668_s19, 4  ;;  %s665_s26 = scalar_lea.vmem [#allocation5], %s3317_s25  ;;  %s671_s6 = int_to_ptr.hbm [resolvable:$true] %s670_s6 }
  0x46   : > { %s672_s0 = sshll.u32 %s665_s26, 4  ;;  %s663_s16 = scalar_lea.sflag [#allocation6], %s662_s29  ;;  %s673_s0 = int_to_ptr.vmem [resolvable:$true] %s672_s0 }
  0x47   : > { %s2984_s17 = sshra.s32 %s671_s6, 4  ;;  %s2991_s3 = scalar_lea.hbm %s4055_s14, 2  ;;  %s2985_s17 = int_to_ptr.hbm [resolvable:$true] %s2984_s17 }
  0x48   : > { %s2986_s30 = scalar_lea.hbm %s2985_s17, 1  ;;  %p2992_p5 = scmp.lt.s32.totalorder %s2985_s17, %s4055_s14 }
  0x49   : > { %p2987_p8 = scmp.ne.s32.totalorder %s2985_s17, %s2986_s30  ;;  %p2993_p12 = scmp.lt.s32.totalorder %s2991_s3, %s2986_s30 }
  0x4b   : > { %p2989_p10 = pnand %p2987_p8, %p2958_p9  ;;  %p2994_p2 = por %p2993_p12, %p2992_p5 }
  0x4d   : > { %p2990_p11 = pneg %p2989_p10 }
  0x4f   : > { %p2995_p4 = pnand %p2994_p2, %p2990_p11 }
  0x51   : > { %2998 = shalt.err (!%p2995_p4)
}
  0x52   : > { %2793 = dma.hbm_to_vmem [thread:$0]  (!%p3330_p7), %s671_s6, 16, %s673_s0, %s663_s16  }
  0x53   : > { %681 = sbr.rel (%p3276_p3) target bundleno = 2626 (0xa42), region = 104  ;;  %s3368_s18 = sand.u32 (!%p3276_p3), 1, %s3112_s28  }
  0x54   : > { %s4019_s19 = sshll.u32 (!%p3276_p3), %s3368_s18, 2  ;;  %s684_s20 = scalar_lea.sflag (!%p3276_p3), [#allocation3], %s3368_s18 }
  0x55   : > { %s3374_s29 = scalar_lea.vmem (!%p3276_p3), [#allocation2], %s4019_s19 }
  0x58   : > { %3087 = dma.done.wait (%p3307_p13), %s684_s20, 64  }
  0x59   : > { %3089 = vsyncadd (%p3307_p13), %s684_s20, 4294967232  ;;  %s693_s30 = sand.u32 1, %s3271_s1   ;;  %s696_s25 = scalar_lea.vmem [#allocation5], %s3368_s18 }
  0x5a   : > { %s694_s5 = scalar_lea.sflag [#allocation6], %s693_s30 }
  0x5b   : > { %3091 = dma.done.wait (%p3307_p13), %s694_s5, 16  }
  0x5c   : > { %3093 = vsyncadd (%p3307_p13), %s694_s5, 4294967280 }
  0x5d   : > { %3095 = dma.done.wait (%p92_p1), [#allocation6], 256  }
  0x5e   : > { %3097 = vsyncadd (%p92_p1), [#allocation6], 4294967040  ;;  %p776_p3 = scmp.lt.s32.totalorder %s3271_s1, 1  ;;  %s4056_s0 = sld [smem:[#allocation23_spill]]  ;;  %vm853_vm0 = vcmask 261120   ;;  %vm934_vm1 = vcmask 257024  }
  0x5f   : > { %s4057_s27 = sld [smem:[#allocation26_spill]]  ;;  %v782_v5 = vld [vmem:[%s3374_s29] sm:$0xf]  ;;  %v3125_v32 = vmov 32.0   ;;  %s3126_s15 = smov 96   ;;  %vm1064_vm13 = vcmask 64512  }
  0x60   : > { %s777_s2 = scalar_select %p776_p3, %s3271_s1, 1  ;;  %v783_v8 = vld [vmem:[%s696_s25] sm:$0x1]  ;;  %v935_v16 = vsel %vm934_vm1, %v782_v5, 0.0  ;;  %vm1245_vm14 = vcmask 31744   ;;  %vm1331_vm15 = vcmask 1041408  }
  0x61   : > { %v2567_v9 = vmul.f32 -1.442695, %v783_v8  ;;  %s4058_s3 = sld [smem:[#allocation27_spill]]  ;;  %s3127_s20 = smov 64  }
  0x62   : > { %s2566_s4 = sshll.u32 %s777_s2, 3  ;;  %s3128_s30 = smov 32  }
  0x63   : > { %2855 = vpow2.f32 %v2567_v9  ;;  %s4061_s7 = sld [smem:[#allocation30_spill]]  ;;  %s3129_s2 = smov 104  }
  0x64   : > { %s3395_s16 = scalar_lea.vmem %s4056_s0, %s2566_s4  ;;  %s4060_s4 = sld [smem:[#allocation28_spill]] }
  0x65   : > { %v781_v0 = vld [vmem:[%s3395_s16] sm:$0xff]  ;;  %v2582_v1 = vld [vmem:[%s4057_s27 + $0x18] sm:$0xf]  ;;  %v2742_v7 = vld [vmem:[%s4057_s27 + $0x8] sm:$0xf0]  ;;  %s4062_s5 = sld [smem:[#allocation29_spill]] }
  0x66   : > { %v896_v2 = vsel %vm853_vm0, %v781_v0, 0.0  ;;  %v2745_v3 = vld [vmem:[%s4057_s27 + $0x20] sm:$0xf0]  ;;  %v2570_v4 = vld [vmem:[%s4057_s27] sm:$0xf]  ;;  %s3130_s6 = smov 120  }
  0x67   : > { %897 = vadd.xlane.f32.xlu0 %v896_v2  ;;  %v2583_v6 = vor.u32 %v2745_v3, %v2582_v1  ;;  %v2744_v10 = vld [vmem:[%s4057_s27 + $0x1c] sm:$0xf]  ;;  %v2584_v11 = vld [vmem:[%s4057_s27 + $0x24] sm:$0xf0]  ;;  %v2571_v12 = vor.u32 %v2742_v7, %v2570_v4  ;;  %v2741_v13 = vld [vmem:[%s4057_s27 + $0x4] sm:$0xf]  ;;  %s4059_s24 = smov %s4058_s3 }
  0x68   : > { %v2572_v14 = vld [vmem:[%s4057_s27 + $0xc] sm:$0xf0]  ;;  %v2587_v15 = vor.u32 %v2744_v10, %v2584_v11  ;;  %v813_v49 = vld [vmem:[%s4058_s3] sm:$0x7]  ;;  %s3131_s26 = smov 112   ;;  %s4063_s3 = sld [smem:[#allocation32_spill]] }
  0x69   : > { %863 = vmatpush.bf16.msra.mxu1 %v2583_v6  ;;  %v2575_v17 = vor.u32 %v2741_v13, %v2572_v14  ;;  %v2856_v18 = vpop.eup %2855  ;;  %v847_v50 = vperm.slane %v813_v49, 0  ;;  %v848_v56 = vperm.slane %v813_v49, 1  ;;  %v2750_v3 = vld [vmem:[%s4061_s7 + $0x8] sm:$0xff]  ;;  %s4065_s21 = sld [smem:[#allocation36_spill]]  ;;  %s2737_s25 = sshll.u32 %s3271_s1, 3 }
  0x6a   : > { %v787_v19 = vadd.f32 1.0, %v2856_v18  ;;  %v2748_v63 = vld [vmem:[%s4060_s4 + $0x8] sm:$0xff]  ;;  %1038 = vmatpush.bf16.msra.mxu0 %v2750_v3  ;;  %s4069_s17 = sld [smem:[#allocation37_spill]] }
  0x6b   : > { %1000 = vmatpush.bf16.msra.mxu3 %v2748_v63 }
  0x6c   : > { %2857 = vrcp.f32 %v787_v19  ;;  %v799_v22 = vand.u32 2147483648, %v787_v19  ;;  %vm793_vm2 = vweird.f32 %v787_v19  ;;  %v797_v24 = vand.u32 2147483647, %v787_v19 }
  0x6d   : > { %864 = vmatpush.bf16.msra.mxu1 %v2571_v12  ;;  %2859 = vrcp.f32 %v3125_v32 }
  0x6e   : > { %v800_v26 = vor.u32 1.1754944e-38, %v799_v22  ;;  %vm798_vm5 = vcmp.eq.f32.partialorder %v797_v24, 8.507059e+37 }
  0x6f   : > { %936 = vadd.xlane.f32.xlu0 %v935_v16  ;;  %v2749_v16 = vld [vmem:[%s4061_s7] sm:$0xff] }
  0x70   : > { %1039 = vmatpush.bf16.msra.mxu0 %v2749_v16 }
  0x71   : > { %876 = vmatpush.bf16.msrb.mxu1 %v2587_v15 }
  0x72   : > { %v2858_v20 = vpop.eup %2857 }
  0x73   : > { %v789_v21 = vmul.f32 %v2858_v20, %v787_v19  ;;  %vm794_vm3 = vweird.f32 %v2858_v20  ;;  %v2860_v33 = vpop.eup %2859 }
  0x74   : > { %vm795_vm4 = vmor %vm793_vm2, %vm794_vm3  ;;  %v900_v34 = vmul.f32 32.0, %v2860_v33  ;;  %vm904_vm6 = vweird.f32 %v2860_v33  ;;  %vm1416_vm2 = vcmask 1043456   ;;  %vm1707_vm3 = vcmask 60416  }
  0x75   : > { %877 = vmatpush.bf16.msrb.mxu1 %v2575_v17  ;;  %v790_v23 = vsub.f32 1.0, %v789_v21 }
  0x76   : > { %v901_v35 = vsub.f32 1.0, %v900_v34 }
  0x77   : > { %v791_v25 = vmul.f32 %v2858_v20, %v790_v23 }
  0x78   : > { %v902_v36 = vmul.f32 %v2860_v33, %v901_v35 }
  0x79   : > { %v792_v27 = vadd.f32 %v2858_v20, %v791_v25 }
  0x7a   : > { %v903_v37 = vadd.f32 %v2860_v33, %v902_v36  ;;  %v2847_v36 = vld [vmem:[%s4062_s5] ss:$0 sm:$0xff]  ;;  %s4064_s5 = smov %s4063_s3 }
  0x7b   : > { %v796_v28 = vsel %vm795_vm4, %v2858_v20, %v792_v27  ;;  %vm1720_vm4 = vcmask 27648  }
  0x7c   : > { %v801_v29 = vsel %vm798_vm5, %v800_v26, %v796_v28  ;;  %v3431_v38 = vsel %vm904_vm6, %v2860_v33, %v903_v37 }
  0x7d   : > { %v803_v30 = vmul.f32 %v801_v29, %v783_v8 }
  0x7f   : > { %v3425_v31 = vpack.c.bf16 %v803_v30, %v803_v30 }
  0x81   : > { %2592 = vmatmul.msk.bf16.vlgmr.msra.gmra.mxu1 %vm853_vm0, %v3425_v31 }
  0x91   : > { %2593 = vmatmul.msk.bf16.vlgmr.msrb.gmra.mxu1 %vm853_vm0, %v3425_v31 }
  0xda   : > { %v898_v39 = vpop.xlane.xlu0 %897 }
  0xdb   : > { %v906_v40 = vmul.f32 %v3431_v38, %v898_v39 }
  0xdd   : > { %v907_v41 = vsub.f32 %v781_v0, %v906_v40  ;;  %v2747_v0 = vld [vmem:[%s4060_s4] sm:$0xff] }
  0xde   : > { %1001 = vmatpush.bf16.msra.mxu3 %v2747_v0 }
  0xdf   : > { %v908_v42 = vmul.f32 %v907_v41, %v907_v41 }
  0xe1   : > { %v909_v43 = vsel %vm853_vm0, %v908_v42, 0.0  ;;  %v2848_v42 = vld [vmem:[%s3987_s8] ss:$0 sm:$0xff] }
  0xe2   : > { %910 = vadd.xlane.f32.xlu1 %v909_v43  ;;  %v937_v44 = vpop.xlane.xlu0 %936 }
  0xe3   : > { %v938_v45 = vmul.f32 %v937_v44, %v3431_v38 }
  0xe5   : > { %v3436_v46 = vsub.f32 %v782_v5, %v938_v45 }
  0xe7   : > { %v940_v47 = vmul.f32 %v3436_v46, %v3436_v46 }
  0xe9   : > { %v941_v48 = vsel %vm934_vm1, %v940_v47, 0.0 }
  0xea   : > { %942 = vadd.xlane.f32.xlu1 %v941_v48 }
  0xfe   : > { %v866_v51 = vpop.f32.mrf.mxu1 }
  0xff   : > { %v867_v52 = vadd.f32 %v866_v51, %v847_v50  ;;  %v2590_v50 = vld [vmem:[%s4057_s27 + $0x20] sm:$0xf]  ;;  %v2746_v51 = vld [vmem:[%s4057_s27 + $0x28] sm:$0xf0] }
 0x101   : > { %v925_v53 = vadd.f32 1.0, %v867_v52  ;;  %v3472_v19 = vperm.slane %v867_v52, 0  ;;  %v2578_v52 = vld [vmem:[%s4057_s27 + $0x8] sm:$0xf] }
 0x103   : > { %v926_v54 = vperm.slane %v925_v53, 0  ;;  %v2591_v53 = vor.u32 %v2746_v51, %v2590_v50 }
 0x105   : > { %928 = vrot.lane.b32.xlu2 %v926_v54, %s3126_s15  ;;  %v2743_v54 = vld [vmem:[%s4057_s27 + $0x10] sm:$0xf0]  ;;  %889 = vmatpush.bf16.msra.mxu2 %v2591_v53 }
 0x106   : > { %v868_v55 = vpop.f32.mrf.mxu1 }
 0x10e   : > { %v879_v57 = vpop.f32.mrf.mxu1 }
 0x10f   : > { %v3445_v58 = vadd.f32 %v879_v57, %v848_v56  ;;  %v2579_v56 = vor.u32 %v2743_v54, %v2578_v52 }
 0x111   : > { %v3448_v59 = vadd.f32 1.0, %v3445_v58  ;;  %v964_v60 = vperm.slane %v3445_v58, 0  ;;  %890 = vmatpush.bf16.msra.mxu2 %v2579_v56 }
 0x113   : > { %v958_v61 = vperm.slane %v3448_v59, 0  ;;  %966 = vrot.lane.b32.xlu0 %v964_v60, %s3127_s20 }
 0x114   : > { %2594 = vmatmul.msk.bf16.vlgmr.msra.gmra.mxu2 %vm853_vm0, %v3425_v31 }
 0x115   : > { %960 = vrot.lane.b32.xlu2 %v958_v61, %s3128_s30 }
 0x116   : > { %v881_v62 = vpop.f32.mrf.mxu1 }
 0x155   : > { %v911_v1 = vpop.xlane.xlu1 %910 }
 0x156   : > { %v912_v2 = vmul.f32 %v911_v1, %v3431_v38 }
 0x158   : > { %v913_v4 = vadd.f32 1e-06, %v912_v2 }
 0x15a   : > { %2861 = vrsqrt.f32 %v913_v4  ;;  %vm920_vm8 = vweird.f32 %v913_v4 }
 0x15d   : > { %v943_v5 = vpop.xlane.xlu1 %942 }
 0x15e   : > { %v944_v6 = vmul.f32 %v943_v5, %v3431_v38 }
 0x15f   : > { %v929_v18 = vpop.permute.xlu2 %928 }
 0x160   : > { %v2862_v7 = vpop.eup %2861  ;;  %v945_v10 = vadd.f32 1e-06, %v944_v6 }
 0x161   : > { %v915_v8 = vmul.f32 %v2862_v7, %v913_v4  ;;  %vm921_vm7 = vweird.f32 %v2862_v7 }
 0x162   : > { %2863 = vrsqrt.f32 %v945_v10  ;;  %vm922_vm9 = vmor %vm920_vm8, %vm921_vm7  ;;  %vm952_vm10 = vweird.f32 %v945_v10 }
 0x163   : > { %v916_v9 = vmul.f32 %v2862_v7, %v915_v8 }
 0x165   : > { %v917_v11 = vmul.f32 0.5, %v916_v9 }
 0x167   : > { %v918_v12 = vsub.f32 1.5, %v917_v11 }
 0x168   : > { %v2864_v17 = vpop.eup %2863 }
 0x169   : > { %v919_v13 = vmul.f32 %v2862_v7, %v918_v12  ;;  %v947_v21 = vmul.f32 %v2864_v17, %v945_v10  ;;  %vm953_vm11 = vweird.f32 %v2864_v17 }
 0x16a   : > { %vm954_vm12 = vmor %vm952_vm10, %vm953_vm11 }
 0x16b   : > { %v923_v14 = vsel %vm922_vm9, %v2862_v7, %v919_v13  ;;  %v948_v24 = vmul.f32 %v2864_v17, %v947_v21 }
 0x16c   : > { %v924_v15 = vmul.f32 %v923_v14, %v907_v41 }
 0x16d   : > { %v949_v25 = vmul.f32 0.5, %v948_v24 }
 0x16e   : > { %v931_v20 = vmul.f32 %v929_v18, %v924_v15 }
 0x16f   : > { %v950_v26 = vsub.f32 1.5, %v949_v25  ;;  %v961_v30 = vpop.permute.xlu2 %960 }
 0x170   : > { %v933_v22 = vadd.f32 %v3472_v19, %v931_v20 }
 0x171   : > { %v951_v27 = vmul.f32 %v2864_v17, %v950_v26 }
 0x172   : > { %v970_v23 = vpack.c.bf16 %v933_v22, %v933_v22 }
 0x173   : > { %v955_v28 = vsel %vm954_vm12, %v2864_v17, %v951_v27 }
 0x174   : > { %2603 = vmatmul.msk.bf16.vlgmr.msra.gmra.mxu3 %vm853_vm0, %v970_v23  ;;  %v956_v29 = vmul.f32 %v955_v28, %v3436_v46 }
 0x176   : > { %v963_v32 = vmul.f32 %v961_v30, %v956_v29 }
 0x185   : > { %v967_v33 = vpop.permute.xlu0 %966 }
 0x186   : > { %v969_v34 = vadd.f32 %v967_v33, %v963_v32 }
 0x188   : > { %v1008_v35 = vpack.c.bf16 %v969_v34, %v969_v34 }
 0x18a   : > { %2612 = vmatmul.msk.bf16.vlgmr.msra.gmra.mxu0 %vm853_vm0, %v1008_v35 }
 0x197   : > { %v3593_v29 = vpop.f32.mrf.mxu2 }
 0x19f   : > { %v894_v33 = vpop.f32.mrf.mxu2 }
 0x1f7   : > { %v1003_v37 = vpop.f32.mrf.mxu3 }
 0x1f8   : > { %v1004_v39 = vadd.f32 %v2847_v36, %v1003_v37 }
 0x1fa   : > { %v3481_v40 = vpack.c.bf16 %v1004_v39, %v1004_v39 }
 0x1fc   : > { %1051 = vrot.lane.b32.xlu0 %v3481_v40, %s3129_s2  ;;  %1047 = vrot.lane.b32.xlu2 %v3481_v40, %s3130_s6  ;;  %v1060_v5 = vunpack.c.l.b16 %v3481_v40 }
 0x1fd   : > { %1049 = vrot.lane.b32.xlu1 %v3481_v40, %s3131_s26 }
 0x1fe   : > { %v3539_v8 = vpack.c.b16 %v1060_v5, %v1060_v5 }
 0x1ff   : > { %v1005_v41 = vpop.f32.mrf.mxu3 }
 0x207   : > { %v1041_v43 = vpop.f32.mrf.mxu0 }
 0x208   : > { %v1042_v44 = vadd.f32 %v2848_v42, %v1041_v43 }
 0x20a   : > { %v3489_v45 = vpack.c.bf16 %v1042_v44, %v1042_v44 }
 0x20c   : > { %1058 = vrot.lane.b32.xlu1 %v3489_v45, %s3129_s2  ;;  %1056 = vrot.lane.b32.xlu2 %v3489_v45, %s3131_s26  ;;  %v1153_v2 = vunpack.c.l.b16 %v3489_v45  ;;  %s4066_s2 = sld [smem:[#allocation31_spill]] }
 0x20d   : > { %s4067_s26 = sld [smem:[#allocation35_spill]] }
 0x20e   : > { %v3533_v7 = vpack.c.b16 %v1153_v2, %v1153_v2 }
 0x20f   : > { %v1043_v46 = vpop.f32.mrf.mxu0 }
 0x214   : > { %1054 = vrot.lane.b32.xlu2 %v3489_v45, %s3130_s6 }
 0x256   : > { %v3494_v47 = vpop.permute.xlu2 %1047 }
 0x257   : > { %v1084_v48 = vunpack.c.l.b16 %v3494_v47 }
 0x259   : > { %v3497_v49 = vpack.c.b16 %v1084_v48, %v1084_v48 }
 0x25b   : > { %1086 = vrot.lane.b32.xlu0 %v3497_v49, %s3126_s15 }
 0x266   : > { %v3513_v55 = vpop.permute.xlu2 %1056 }
 0x267   : > { %v1193_v57 = vunpack.c.l.b16 %v3513_v55 }
 0x269   : > { %v3516_v0 = vpack.c.b16 %v1193_v57, %v1193_v57 }
 0x26b   : > { %1195 = vrot.lane.b32.xlu1 %v3516_v0, %s3126_s15 }
 0x26e   : > { %v3527_v3 = vpop.permute.xlu2 %1054  ;;  %v1052_v9 = vpop.permute.xlu0 %1051 }
 0x26f   : > { %v1050_v62 = vpop.permute.xlu1 %1049  ;;  %v1173_v4 = vunpack.c.l.b16 %v3527_v3  ;;  %v1130_v31 = vunpack.c.l.b16 %v1052_v9 }
 0x270   : > { %v1107_v63 = vunpack.c.l.b16 %v1050_v62 }
 0x271   : > { %v3531_v6 = vpack.c.b16 %v1173_v4, %v1173_v4  ;;  %v3543_v10 = vpack.c.b16 %v1130_v31, %v1130_v31 }
 0x272   : > { %v3520_v1 = vpack.c.b16 %v1107_v63, %v1107_v63 }
 0x273   : > { %1175 = vrot.lane.b32.xlu0 %v3531_v6, %s3126_s15  ;;  %1155 = vrot.lane.b32.xlu1 %v3533_v7, %s3126_s15 }
 0x274   : > { %1109 = vrot.lane.b32.xlu2 %v3520_v1, %s3126_s15 }
 0x27c   : > { %1062 = vrot.lane.b32.xlu2 %v3539_v8, %s3126_s15 }
 0x27e   : > { %v3547_v11 = vpop.permute.xlu1 %1058 }
 0x27f   : > { %v1213_v12 = vunpack.c.l.b16 %v3547_v11 }
 0x281   : > { %v3550_v13 = vpack.c.b16 %v1213_v12, %v1213_v12 }
 0x283   : > { %1215 = vrot.lane.b32.xlu0 %v3550_v13, %s3126_s15 }
 0x284   : > { %1132 = vrot.lane.b32.xlu2 %v3543_v10, %s3126_s15 }
 0x2cd   : > { %v1087_v14 = vpop.permute.xlu0 %1086 }
 0x2ce   : > { %v1110_v15 = vpop.permute.xlu2 %1109  ;;  %v3555_v16 = vsel %vm1064_vm13, %v1087_v14, 0 }
 0x2cf   : > { %1101 = vmatpush.bf16.xpose.msrb.mxu2 %v3555_v16  ;;  %v3559_v17 = vsel %vm1064_vm13, %v1110_v15, 0 }
 0x2d0   : > { %1124 = vmatpush.bf16.xpose.msrb.mxu3 %v3559_v17 }
 0x2d6   : > { %v1063_v18 = vpop.permute.xlu2 %1062  ;;  %2614 = vmatmul.msk.bf16.vlgmr.msrb.gmra.mxu2 %vm1064_vm13, %v3494_v47 }
 0x2d7   : > { %v3565_v20 = vsel %vm1064_vm13, %v1063_v18, 0  ;;  %2615 = vmatmul.msk.bf16.vlgmr.msrb.gmra.mxu3 %vm1064_vm13, %v1050_v62 }
 0x2d8   : > { %1078 = vmatpush.bf16.xpose.msra.mxu1 %v3565_v20 }
 0x2dd   : > { %v1196_v23 = vpop.permute.xlu1 %1195 }
 0x2de   : > { %v1133_v21 = vpop.permute.xlu2 %1132  ;;  %v3576_v24 = vsel %vm1064_vm13, %v1196_v23, 0 }
 0x2df   : > { %2613 = vmatmul.msk.bf16.vlgmr.msra.gmra.mxu1 %vm1064_vm13, %v3481_v40  ;;  %v3572_v22 = vsel %vm1064_vm13, %v1133_v21, 0  ;;  %1207 = vmatpush.bf16.xpose.msra.mxu3 %v3576_v24 }
 0x2e0   : > { %1147 = vmatpush.bf16.xpose.msrb.mxu0 %v3572_v22 }
 0x2e5   : > { %v1156_v25 = vpop.permute.xlu1 %1155  ;;  %v1176_v26 = vpop.permute.xlu0 %1175 }
 0x2e6   : > { %v3581_v27 = vsel %vm1064_vm13, %v1156_v25, 0  ;;  %v3584_v28 = vsel %vm1064_vm13, %v1176_v26, 0 }
 0x2e7   : > { %2616 = vmatmul.msk.bf16.vlgmr.msrb.gmra.mxu0 %vm1064_vm13, %v1052_v9  ;;  %2619 = vmatmul.msk.bf16.vlgmr.msra.gmra.mxu3 %vm1064_vm13, %v1050_v62 }
 0x2e8   : > { %1167 = vmatpush.bf16.xpose.msrb.mxu1 %v3581_v27  ;;  %1187 = vmatpush.bf16.xpose.msra.mxu2 %v3584_v28 }
 0x2ef   : > { %2617 = vmatmul.msk.bf16.vlgmr.msrb.gmra.mxu1 %vm1064_vm13, %v3481_v40  ;;  %2618 = vmatmul.msk.bf16.vlgmr.msra.gmra.mxu2 %vm1064_vm13, %v3494_v47 }
 0x2f5   : > { %v1216_v30 = vpop.permute.xlu0 %1215 }
 0x2f6   : > { %v3596_v32 = vsel %vm1064_vm13, %v1216_v30, 0 }
 0x2f7   : > { %1227 = vmatpush.bf16.xpose.msra.mxu0 %v3596_v32 }
 0x2fe   : > { %2620 = vmatmul.msk.bf16.vlgmr.msra.gmra.mxu0 %vm1064_vm13, %v1052_v9 }
 0x359   : > { %v3600_v34 = vpop.f32.mrf.mxu2 }
 0x35a   : > { %v3602_v35 = vpop.f32.mrf.mxu3  ;;  %v1236_v42 = vsel %vm1064_vm13, %v3600_v34, -inf }
 0x35b   : > { %v1239_v36 = vsel %vm1064_vm13, %v3602_v35, -inf }
 0x35c   : > { %v3606_v37 = vpop.f32.mrf.mxu1  ;;  %1240 = vmax.xlane.f32.xlu2 %v1239_v36 }
 0x35d   : > { %v1233_v39 = vsel %vm1064_vm13, %v3606_v37, -inf }
 0x35e   : > { %1234 = vmax.xlane.f32.xlu0 %v1233_v39 }
 0x361   : > { %v1105_v40 = vpop.f32.mrf.mxu2 }
 0x362   : > { %v1128_v41 = vpop.f32.mrf.mxu3 }
 0x364   : > { %v1082_v43 = vpop.f32.mrf.mxu1  ;;  %v3612_v44 = vpop.f32.mrf.mxu0  ;;  %1237 = vmax.xlane.f32.xlu2 %v1236_v42 }
 0x365   : > { %v1242_v63 = vsel %vm1064_vm13, %v3612_v44, -inf }
 0x36a   : > { %v3614_v47 = vpop.f32.mrf.mxu3 }
 0x36b   : > { %v1252_v2 = vsel %vm1245_vm14, %v3614_v47, -inf }
 0x36c   : > { %v1151_v46 = vpop.f32.mrf.mxu0  ;;  %v1169_v48 = vpop.f32.mrf.mxu1 }
 0x36d   : > { %v1246_v50 = vsel %vm1245_vm14, %v1169_v48, -inf }
 0x36e   : > { %1247 = vmax.xlane.f32.xlu1 %v1246_v50 }
 0x372   : > { %v1189_v51 = vpop.f32.mrf.mxu2  ;;  %v1211_v52 = vpop.f32.mrf.mxu3 }
 0x373   : > { %v1249_v53 = vsel %vm1245_vm14, %v1189_v51, -inf }
 0x374   : > { %v1171_v54 = vpop.f32.mrf.mxu1  ;;  %1250 = vmax.xlane.f32.xlu0 %v1249_v53 }
 0x37a   : > { %v1191_v56 = vpop.f32.mrf.mxu2 }
 0x37b   : > { %v3620_v57 = vpop.f32.mrf.mxu0 }
 0x37c   : > { %1369 = vrot.lane.b32.xlu2 %v3516_v0, %s3127_s20  ;;  %v1255_v0 = vsel %vm1245_vm14, %v3620_v57, -inf }
 0x383   : > { %v1231_v62 = vpop.f32.mrf.mxu0 }
 0x387   : > { %1326 = vrot.lane.b32.xlu1 %v3533_v7, %s3127_s20 }
 0x388   : > { %1348 = vrot.lane.b32.xlu0 %v3531_v6, %s3127_s20 }
 0x3a5   : > { %1243 = vmax.xlane.f32.xlu2 %v1242_v63 }
 0x3b1   : > { %1253 = vmax.xlane.f32.xlu1 %v1252_v2 }
 0x3b2   : > { %1256 = vmax.xlane.f32.xlu0 %v1255_v0 }
 0x3ca   : > { %1454 = vrot.lane.b32.xlu1 %v3520_v1, %s3127_s20 }
 0x3cf   : > { %v1241_v4 = vpop.xlane.xlu2 %1240 }
 0x3d1   : > { %v1235_v9 = vpop.xlane.xlu0 %1234 }
 0x3d2   : > { %1390 = vrot.lane.b32.xlu1 %v3550_v13, %s3127_s20 }
 0x3d7   : > { %v1238_v5 = vpop.xlane.xlu2 %1237 }
 0x3da   : > { %1411 = vrot.lane.b32.xlu1 %v3539_v8, %s3127_s20 }
 0x3df   : > { %v1370_v6 = vpop.permute.xlu2 %1369 }
 0x3e0   : > { %v3639_v7 = vsel %vm1331_vm15, %v1370_v6, 0  ;;  %v1543_v6 = vld [vmem:[%s3988_s9 + $0x8] sm:$0xf] }
 0x3e1   : > { %1384 = vmatpush.bf16.msrb.mxu3 %v3639_v7  ;;  %v1248_v31 = vpop.xlane.xlu1 %1247 }
 0x3e2   : > { %1433 = vrot.lane.b32.xlu1 %v3497_v49, %s3127_s20  ;;  %v1258_v1 = vmax.f32 %v1235_v9, %v1248_v31 }
 0x3e4   : > { %v1274_v13 = vsub.f32 %v1169_v48, %v1258_v1  ;;  %v1262_v36 = vsub.f32 %v3606_v37, %v1258_v1 }
 0x3e6   : > { %v1278_v18 = vmul.f32 1.442695, %v1274_v13  ;;  %v1266_v39 = vmul.f32 1.442695, %v1262_v36 }
 0x3e7   : > { %v1251_v12 = vpop.xlane.xlu0 %1250 }
 0x3e8   : > { %v1259_v14 = vmax.f32 %v1238_v5, %v1251_v12  ;;  %2865 = vpow2.f32 %v1278_v18  ;;  %v1548_v12 = vsel %vm1416_vm2, %v1543_v6, 0 }
 0x3ea   : > { %1475 = vrot.lane.b32.xlu1 %v3543_v10, %s3127_s20  ;;  %v1275_v15 = vsub.f32 %v1189_v51, %v1259_v14  ;;  %v1263_v52 = vsub.f32 %v3600_v34, %v1259_v14 }
 0x3ec   : > { %v1280_v8 = vmul.f32 1.442695, %v1275_v15  ;;  %v1268_v54 = vmul.f32 1.442695, %v1263_v52 }
 0x3ee   : > { %2867 = vpow2.f32 %v1280_v8  ;;  %v2866_v21 = vpop.eup %2865 }
 0x3ef   : > { %v1322_v33 = vpack.c.bf16 %v2866_v21, %v2866_v21  ;;  %2869 = vpow2.f32 %v1266_v39 }
 0x3f4   : > { %v2868_v25 = vpop.eup %2867 }
 0x3f5   : > { %v1323_v10 = vpack.c.bf16 %v2868_v25, %v2868_v25  ;;  %v3657_v40 = vpop.eup %2869  ;;  %v1301_v13 = vsel %vm1245_vm14, %v2868_v25, 0.0  ;;  %v1503_v25 = vld [vmem:[%s3988_s9 + $0x4] sm:$0xf] }
 0x3f6   : > { %v1286_v41 = vsel %vm1064_vm13, %v3657_v40, 0.0  ;;  %v1508_v36 = vsel %vm1416_vm2, %v1503_v25, 0 }
 0x3f9   : > { %v1327_v23 = vpop.permute.xlu1 %1326 }
 0x3fa   : > { %v3647_v26 = vsel %vm1331_vm15, %v1327_v23, 0  ;;  %v1349_v49 = vpop.permute.xlu0 %1348 }
 0x3fb   : > { %v3650_v30 = vsel %vm1331_vm15, %v1349_v49, 0  ;;  %1342 = vmatpush.bf16.msra.mxu1 %v3647_v26 }
 0x3fc   : > { %1363 = vmatpush.bf16.msrb.mxu2 %v3650_v30 }
 0x3fe   : > { %2621 = vmatmul.msk.bf16.vlgmr.msra.gmra.mxu1 %vm1245_vm14, %v1322_v33 }
 0x3ff   : > { %2622 = vmatmul.msk.bf16.vlgmr.msrb.gmra.mxu2 %vm1245_vm14, %v1323_v10 }
 0x414   : > { %1287 = vadd.xlane.f32.xlu1 %v1286_v41  ;;  %v1501_v41 = vld [vmem:[%s3988_s9] sm:$0xf] }
 0x418   : > { %v1244_v53 = vpop.xlane.xlu2 %1243 }
 0x424   : > { %v1254_v42 = vpop.xlane.xlu1 %1253 }
 0x425   : > { %v1260_v43 = vmax.f32 %v1241_v4, %v1254_v42  ;;  %v1257_v37 = vpop.xlane.xlu0 %1256 }
 0x426   : > { %v1261_v56 = vmax.f32 %v1244_v53, %v1257_v37 }
 0x427   : > { %v1264_v46 = vsub.f32 %v3602_v35, %v1260_v43  ;;  %v1276_v48 = vsub.f32 %v3614_v47, %v1260_v43  ;;  %v1527_v43 = vsel %vm1416_vm2, %v1501_v41, 0 }
 0x428   : > { %v1265_v2 = vsub.f32 %v3612_v44, %v1261_v56  ;;  %v1277_v4 = vsub.f32 %v3620_v57, %v1261_v56  ;;  %v1298_v44 = vsel %vm1245_vm14, %v2866_v21, 0.0 }
 0x429   : > { %v1270_v50 = vmul.f32 1.442695, %v1264_v46  ;;  %v1282_v51 = vmul.f32 1.442695, %v1276_v48 }
 0x42a   : > { %v1272_v34 = vmul.f32 1.442695, %v1265_v2  ;;  %v1284_v9 = vmul.f32 1.442695, %v1277_v4 }
 0x42b   : > { %2871 = vpow2.f32 %v1270_v50 }
 0x42c   : > { %2873 = vpow2.f32 %v1282_v51 }
 0x42d   : > { %2875 = vpow2.f32 %v1268_v54 }
 0x42e   : > { %2877 = vpow2.f32 %v1272_v34 }
 0x42f   : > { %2879 = vpow2.f32 %v1284_v9 }
 0x431   : > { %v2872_v62 = vpop.eup %2871 }
 0x432   : > { %v2874_v63 = vpop.eup %2873  ;;  %v1292_v0 = vsel %vm1064_vm13, %v2872_v62, 0.0  ;;  %v1320_v15 = vpack.c.bf16 %v2872_v62, %v2872_v62 }
 0x433   : > { %v1324_v35 = vpack.c.bf16 %v2874_v63, %v2874_v63  ;;  %1293 = vadd.xlane.f32.xlu2 %v1292_v0  ;;  %v1304_v47 = vsel %vm1245_vm14, %v2874_v63, 0.0  ;;  %v2876_v5 = vpop.eup %2875 }
 0x434   : > { %1305 = vadd.xlane.f32.xlu0 %v1304_v47  ;;  %v1289_v31 = vsel %vm1064_vm13, %v2876_v5, 0.0  ;;  %v2878_v57 = vpop.eup %2877  ;;  %v1319_v48 = vpack.c.bf16 %v2876_v5, %v2876_v5 }
 0x435   : > { %2623 = vmatmul.msk.bf16.vlgmr.msrb.gmra.mxu3 %vm1245_vm14, %v1324_v35  ;;  %v1295_v18 = vsel %vm1064_vm13, %v2878_v57, 0.0  ;;  %v2880_v8 = vpop.eup %2879  ;;  %v1321_v52 = vpack.c.bf16 %v2878_v57, %v2878_v57 }
 0x436   : > { %v1325_v49 = vpack.c.bf16 %v2880_v8, %v2880_v8  ;;  %v1307_v33 = vsel %vm1245_vm14, %v2880_v8, 0.0 }
 0x43b   : > { %1299 = vadd.xlane.f32.xlu2 %v1298_v44 }
 0x43c   : > { %1290 = vadd.xlane.f32.xlu0 %v1289_v31  ;;  %v1455_v1 = vpop.permute.xlu1 %1454 }
 0x43d   : > { %v3676_v14 = vsel %vm1416_vm2, %v1455_v1, 0 }
 0x43e   : > { %1469 = vmatpush.bf16.msra.mxu3 %v3676_v14 }
 0x442   : > { %1557 = vmatpush.bf16.msrb.mxu3 %v1548_v12 }
 0x443   : > { %1302 = vadd.xlane.f32.xlu2 %v1301_v13 }
 0x444   : > { %1296 = vadd.xlane.f32.xlu0 %v1295_v18  ;;  %v1391_v21 = vpop.permute.xlu1 %1390 }
 0x445   : > { %v3682_v23 = vsel %vm1331_vm15, %v1391_v21, 0  ;;  %2627 = vmatmul.msk.bf16.vlgmr.msra.gmra.mxu3 %vm1064_vm13, %v1320_v15 }
 0x446   : > { %1633 = vmatpush.bf16.xpose.msra.mxu3 %v3559_v17  ;;  %1405 = vmatpush.bf16.msrb.mxu0 %v3682_v23  ;;  %v1318_v17 = vpack.c.bf16 %v3657_v40, %v3657_v40  ;;  %v1565_v40 = vld [vmem:[%s3988_s9 + $0xc] sm:$0xf] }
 0x449   : > { %2624 = vmatmul.msk.bf16.vlgmr.msrb.gmra.mxu0 %vm1245_vm14, %v1325_v49 }
 0x44b   : > { %1308 = vadd.xlane.f32.xlu2 %v1307_v33 }
 0x44c   : > { %v1412_v10 = vpop.permute.xlu1 %1411 }
 0x44d   : > { %v3694_v39 = vsel %vm1416_vm2, %v1412_v10, 0 }
 0x44e   : > { %1427 = vmatpush.bf16.msrb.mxu1 %v3694_v39 }
 0x451   : > { %2625 = vmatmul.msk.bf16.vlgmr.msrb.gmra.mxu1 %vm1064_vm13, %v1318_v17 }
 0x452   : > { %1517 = vmatpush.bf16.msra.mxu1 %v1508_v36 }
 0x454   : > { %v1434_v42 = vpop.permute.xlu1 %1433 }
 0x455   : > { %v3706_v46 = vsel %vm1416_vm2, %v1434_v42, 0 }
 0x456   : > { %1601 = vmatpush.bf16.xpose.msrb.mxu1 %v3565_v20  ;;  %1448 = vmatpush.bf16.msra.mxu2 %v3706_v46  ;;  %v1570_v20 = vsel %vm1416_vm2, %v1565_v40, 0 }
 0x459   : > { %2626 = vmatmul.msk.bf16.vlgmr.msra.gmra.mxu2 %vm1064_vm13, %v1319_v48 }
 0x45a   : > { %1536 = vmatpush.bf16.msrb.mxu2 %v1527_v43 }
 0x45c   : > { %v1476_v50 = vpop.permute.xlu1 %1475 }
 0x45d   : > { %v3716_v51 = vsel %vm1416_vm2, %v1476_v50, 0 }
 0x45e   : > { %1617 = vmatpush.bf16.xpose.msra.mxu2 %v3555_v16  ;;  %1490 = vmatpush.bf16.msra.mxu0 %v3716_v51 }
 0x461   : > { %2628 = vmatmul.msk.bf16.vlgmr.msra.gmra.mxu0 %vm1064_vm13, %v1321_v52 }
 0x462   : > { %1579 = vmatpush.bf16.msrb.mxu0 %v1570_v20 }
 0x466   : > { %1649 = vmatpush.bf16.xpose.msra.mxu0 %v3572_v22 }
 0x47b   : > { %v1344_v37 = vpop.f32.mrf.mxu1 }
 0x482   : > { %v1365_v53 = vpop.f32.mrf.mxu2 }
 0x483   : > { %v1346_v54 = vpop.f32.mrf.mxu1 }
 0x487   : > { %v1288_v47 = vpop.xlane.xlu1 %1287 }
 0x48a   : > { %v1367_v56 = vpop.f32.mrf.mxu2 }
 0x4a6   : > { %v1294_v62 = vpop.xlane.xlu2 %1293 }
 0x4a7   : > { %v1306_v63 = vpop.xlane.xlu0 %1305 }
 0x4a8   : > { %v1312_v0 = vadd.f32 %v1306_v63, %v1294_v62 }
 0x4aa   : > { %2881 = vrcp.f32 %v1312_v0 }
 0x4ae   : > { %v1300_v2 = vpop.xlane.xlu2 %1299 }
 0x4af   : > { %v1310_v34 = vadd.f32 %v1300_v2, %v1288_v47  ;;  %v1291_v22 = vpop.xlane.xlu0 %1290 }
 0x4b0   : > { %v2882_v44 = vpop.eup %2881 }
 0x4b1   : > { %2883 = vrcp.f32 %v1310_v34 }
 0x4b6   : > { %v1303_v6 = vpop.xlane.xlu2 %1302 }
 0x4b7   : > { %v2884_v15 = vpop.eup %2883  ;;  %v1311_v25 = vadd.f32 %v1303_v6, %v1291_v22  ;;  %v1297_v33 = vpop.xlane.xlu0 %1296 }
 0x4b8   : > { %v1386_v16 = vpop.f32.mrf.mxu3 }
 0x4b9   : > { %2885 = vrcp.f32 %v1311_v25 }
 0x4be   : > { %v1309_v21 = vpop.xlane.xlu2 %1308 }
 0x4bf   : > { %v1313_v10 = vadd.f32 %v1309_v21, %v1297_v33  ;;  %v2886_v42 = vpop.eup %2885 }
 0x4c0   : > { %v1388_v35 = vpop.f32.mrf.mxu3 }
 0x4c1   : > { %2887 = vrcp.f32 %v1313_v10 }
 0x4c6   : > { %v1407_v4 = vpop.f32.mrf.mxu0 }
 0x4c7   : > { %v2888_v40 = vpop.eup %2887 }
 0x4c8   : > { %v1471_v5 = vpop.f32.mrf.mxu3 }
 0x4c9   : > { %v1472_v9 = vadd.f32 %v1471_v5, %v1386_v16 }
 0x4cb   : > { %v1498_v31 = vmul.f32 %v2882_v44, %v1472_v9 }
 0x4cd   : > { %v1542_v1 = vpack.c.bf16 %v1498_v31, %v1498_v31 }
 0x4ce   : > { %v1409_v12 = vpop.f32.mrf.mxu0  ;;  %v1429_v57 = vpop.f32.mrf.mxu1 }
 0x4cf   : > { %v1430_v13 = vadd.f32 %v1429_v57, %v1344_v37  ;;  %2631 = vmatmul.msk.bf16.vlgmr.msrb.gmra.mxu3 %vm1064_vm13, %v1542_v1 }
 0x4d0   : > { %1688 = vmatpush.bf16.xpose.msrb.mxu3 %v3576_v24  ;;  %v1473_v18 = vpop.f32.mrf.mxu3 }
 0x4d1   : > { %v1496_v8 = vmul.f32 %v2884_v15, %v1430_v13 }
 0x4d3   : > { %v1500_v49 = vpack.c.bf16 %v1496_v8, %v1496_v8 }
 0x4d5   : > { %2630 = vmatmul.msk.bf16.vlgmr.msrb.gmra.mxu2 %vm1064_vm13, %v1500_v49 }
 0x4d6   : > { %1675 = vmatpush.bf16.xpose.msrb.mxu2 %v3584_v28  ;;  %v1431_v36 = vpop.f32.mrf.mxu1 }
 0x4dc   : > { %v1450_v17 = vpop.f32.mrf.mxu2 }
 0x4dd   : > { %v1451_v41 = vadd.f32 %v1450_v17, %v1365_v53 }
 0x4de   : > { %v1492_v43 = vpop.f32.mrf.mxu0 }
 0x4df   : > { %v1497_v48 = vmul.f32 %v2886_v42, %v1451_v41  ;;  %v1493_v24 = vadd.f32 %v1492_v43, %v1407_v4  ;;  %2635 = vmatmul.msk.bf16.vlgmr.msra.gmra.mxu3 %vm1064_vm13, %v3513_v55 }
 0x4e0   : > { %1843 = vmatpush.bf16.msra.mxu3 %v3639_v7 }
 0x4e1   : > { %v1502_v50 = vpack.c.bf16 %v1497_v48, %v1497_v48  ;;  %v1499_v20 = vmul.f32 %v2888_v40, %v1493_v24 }
 0x4e3   : > { %v1564_v52 = vpack.c.bf16 %v1499_v20, %v1499_v20  ;;  %2629 = vmatmul.msk.bf16.vlgmr.msra.gmra.mxu1 %vm1064_vm13, %v1502_v50 }
 0x4e4   : > { %1662 = vmatpush.bf16.xpose.msra.mxu1 %v3581_v27  ;;  %v1452_v28 = vpop.f32.mrf.mxu2 }
 0x4e5   : > { %2632 = vmatmul.msk.bf16.vlgmr.msrb.gmra.mxu0 %vm1064_vm13, %v1564_v52  ;;  %2634 = vmatmul.msk.bf16.vlgmr.msra.gmra.mxu2 %vm1064_vm13, %v3527_v3 }
 0x4e6   : > { %1701 = vmatpush.bf16.xpose.msrb.mxu0 %v3596_v32  ;;  %1827 = vmatpush.bf16.msra.mxu2 %v3650_v30  ;;  %v1494_v37 = vpop.f32.mrf.mxu0 }
 0x4ef   : > { %2639 = vmatmul.msk.bf16.vlgmr.msrb.gmra.mxu3 %vm1064_vm13, %v3513_v55 }
 0x4f0   : > { %1907 = vmatpush.bf16.msrb.mxu3 %v3676_v14 }
 0x4f3   : > { %2633 = vmatmul.msk.bf16.vlgmr.msrb.gmra.mxu1 %vm1064_vm13, %v3489_v45 }
 0x4f4   : > { %1811 = vmatpush.bf16.msrb.mxu1 %v3647_v26 }
 0x4f5   : > { %2636 = vmatmul.msk.bf16.vlgmr.msra.gmra.mxu0 %vm1064_vm13, %v3547_v11  ;;  %2638 = vmatmul.msk.bf16.vlgmr.msrb.gmra.mxu2 %vm1064_vm13, %v3527_v3 }
 0x4f6   : > { %1859 = vmatpush.bf16.msra.mxu0 %v3682_v23  ;;  %1891 = vmatpush.bf16.msrb.mxu2 %v3706_v46 }
 0x503   : > { %2637 = vmatmul.msk.bf16.vlgmr.msra.gmra.mxu1 %vm1064_vm13, %v3489_v45 }
 0x504   : > { %1875 = vmatpush.bf16.msra.mxu1 %v3694_v39 }
 0x505   : > { %2640 = vmatmul.msk.bf16.vlgmr.msrb.gmra.mxu0 %vm1064_vm13, %v3547_v11 }
 0x506   : > { %1923 = vmatpush.bf16.msrb.mxu0 %v3716_v51 }
 0x552   : > { %v1559_v55 = vpop.f32.mrf.mxu3 }
 0x558   : > { %v1538_v27 = vpop.f32.mrf.mxu2 }
 0x55a   : > { %v1561_v32 = vpop.f32.mrf.mxu3 }
 0x560   : > { %v1519_v7 = vpop.f32.mrf.mxu1  ;;  %v1540_v26 = vpop.f32.mrf.mxu2 }
 0x561   : > { %v1539_v3 = vadd.f32 %v1538_v27, %v1519_v7 }
 0x562   : > { %v1635_v30 = vpop.f32.mrf.mxu3  ;;  %v1581_v14 = vpop.f32.mrf.mxu0 }
 0x563   : > { %v1563_v23 = vadd.f32 %v1559_v55, %v1539_v3  ;;  %v1714_v47 = vsel %vm1707_vm3, %v1635_v30, -inf }
 0x565   : > { %v3753_v46 = vadd.f32 %v1581_v14, %v1563_v23 }
 0x568   : > { %v1521_v53 = vpop.f32.mrf.mxu1  ;;  %v3755_v45 = vpop.f32.mrf.mxu2 }
 0x569   : > { %v1711_v5 = vsel %vm1707_vm3, %v3755_v45, -inf }
 0x56a   : > { %v1637_v39 = vpop.f32.mrf.mxu3  ;;  %v1583_v54 = vpop.f32.mrf.mxu0 }
 0x570   : > { %v1603_v56 = vpop.f32.mrf.mxu1  ;;  %v1621_v11 = vpop.f32.mrf.mxu2 }
 0x571   : > { %v1708_v51 = vsel %vm1707_vm3, %v1603_v56, -inf }
 0x572   : > { %v1690_v62 = vpop.f32.mrf.mxu3  ;;  %1709 = vmax.xlane.f32.xlu0 %v1708_v51  ;;  %v3758_v16 = vpop.f32.mrf.mxu0 }
 0x573   : > { %v1727_v63 = vsel %vm1720_vm4, %v1690_v62, -inf  ;;  %v1717_v31 = vsel %vm1707_vm3, %v3758_v16, -inf }
 0x574   : > { %1728 = vmax.xlane.f32.xlu2 %v1727_v63 }
 0x578   : > { %v1605_v2 = vpop.f32.mrf.mxu1  ;;  %v1677_v0 = vpop.f32.mrf.mxu2 }
 0x579   : > { %v1724_v35 = vsel %vm1720_vm4, %v1677_v0, -inf }
 0x57a   : > { %v1692_v34 = vpop.f32.mrf.mxu3  ;;  %1725 = vmax.xlane.f32.xlu1 %v1724_v35  ;;  %1715 = vmax.xlane.f32.xlu0 %v1714_v47  ;;  %v1653_v4 = vpop.f32.mrf.mxu0 }
 0x57c   : > { %1712 = vmax.xlane.f32.xlu2 %v1711_v5 }
 0x580   : > { %v1664_v6 = vpop.f32.mrf.mxu1  ;;  %v1679_v9 = vpop.f32.mrf.mxu2 }
 0x581   : > { %v1721_v44 = vsel %vm1720_vm4, %v1664_v6, -inf }
 0x582   : > { %1722 = vmax.xlane.f32.xlu0 %v1721_v44  ;;  %v1703_v22 = vpop.f32.mrf.mxu0 }
 0x583   : > { %v1730_v12 = vsel %vm1720_vm4, %v1703_v22, -inf }
 0x584   : > { %1718 = vmax.xlane.f32.xlu2 %v1717_v31 }
 0x588   : > { %v1666_v1 = vpop.f32.mrf.mxu1 }
 0x58a   : > { %1731 = vmax.xlane.f32.xlu0 %v1730_v12  ;;  %v1705_v57 = vpop.f32.mrf.mxu0  ;;  %v1976_v12 = vld [vmem:[%s3990_s11 + $0x8] sm:$0xf] }
 0x58b   : > { %v1981_v57 = vsel %vm1416_vm2, %v1976_v12, 0 }
 0x5e5   : > { %v1710_v13 = vpop.xlane.xlu0 %1709 }
 0x5e7   : > { %v1729_v15 = vpop.xlane.xlu2 %1728 }
 0x5ed   : > { %v1726_v18 = vpop.xlane.xlu1 %1725  ;;  %v1716_v8 = vpop.xlane.xlu0 %1715 }
 0x5ee   : > { %v1735_v21 = vmax.f32 %v1716_v8, %v1729_v15  ;;  %v1934_v15 = vld [vmem:[%s3990_s11] sm:$0xf] }
 0x5ef   : > { %v1713_v49 = vpop.xlane.xlu2 %1712 }
 0x5f0   : > { %v1739_v25 = vsub.f32 %v1635_v30, %v1735_v21  ;;  %v1751_v33 = vsub.f32 %v1690_v62, %v1735_v21  ;;  %v1734_v10 = vmax.f32 %v1713_v49, %v1726_v18  ;;  %v1960_v18 = vsel %vm1416_vm2, %v1934_v15, 0 }
 0x5f2   : > { %v1745_v36 = vmul.f32 1.442695, %v1739_v25  ;;  %v1757_v17 = vmul.f32 1.442695, %v1751_v33  ;;  %v1750_v41 = vsub.f32 %v1677_v0, %v1734_v10  ;;  %v1738_v37 = vsub.f32 %v3755_v45, %v1734_v10  ;;  %v1998_v25 = vld [vmem:[%s3990_s11 + $0xc] sm:$0xf] }
 0x5f3   : > { %v2003_v33 = vsel %vm1416_vm2, %v1998_v25, 0 }
 0x5f4   : > { %2889 = vpow2.f32 %v1745_v36  ;;  %v1755_v42 = vmul.f32 1.442695, %v1750_v41  ;;  %v1743_v14 = vmul.f32 1.442695, %v1738_v37 }
 0x5f5   : > { %2891 = vpow2.f32 %v1757_v17  ;;  %v1723_v43 = vpop.xlane.xlu0 %1722 }
 0x5f6   : > { %v1733_v48 = vmax.f32 %v1710_v13, %v1723_v43  ;;  %2893 = vpow2.f32 %v1755_v42  ;;  %v1936_v13 = vld [vmem:[%s3990_s11 + $0x4] sm:$0xf]  ;;  %v2921_v43 = vld [vmem:[%s4059_s24] sm:$0x7] }
 0x5f7   : > { %v1719_v7 = vpop.xlane.xlu2 %1718 }
 0x5f8   : > { %v1737_v24 = vsub.f32 %v1603_v56, %v1733_v48  ;;  %v1749_v40 = vsub.f32 %v1664_v6, %v1733_v48  ;;  %v2849_v6 = vld [vmem:[%s3989_s10] ss:$0 sm:$0xff]  ;;  %v849_v48 = vperm.slane %v2921_v43, 2 }
 0x5f9   : > { %v1590_v31 = vadd.f32 %v2849_v6, %v3753_v46  ;;  %v1941_v46 = vsel %vm1416_vm2, %v1936_v13, 0 }
 0x5fa   : > { %v2890_v50 = vpop.eup %2889  ;;  %v1741_v20 = vmul.f32 1.442695, %v1737_v24  ;;  %v1753_v52 = vmul.f32 1.442695, %v1749_v40 }
 0x5fb   : > { %v2892_v28 = vpop.eup %2891  ;;  %v1767_v55 = vsel %vm1707_vm3, %v2890_v50, 0.0  ;;  %v1795_v35 = vpack.c.bf16 %v2890_v50, %v2890_v50 }
 0x5fc   : > { %v1799_v27 = vpack.c.bf16 %v2892_v28, %v2892_v28  ;;  %2895 = vpow2.f32 %v1741_v20  ;;  %1768 = vadd.xlane.f32.xlu0 %v1767_v55  ;;  %v2894_v32 = vpop.eup %2893  ;;  %v1779_v0 = vsel %vm1720_vm4, %v2892_v28, 0.0  ;;  %v893_v28 = vadd.f32 %v3593_v29, %v849_v48 }
 0x5fd   : > { %2897 = vpow2.f32 %v1753_v52  ;;  %v1732_v26 = vpop.xlane.xlu0 %1731  ;;  %v1798_v3 = vpack.c.bf16 %v2894_v32, %v2894_v32  ;;  %v1776_v56 = vsel %vm1720_vm4, %v2894_v32, 0.0 }
 0x5fe   : > { %2643 = vmatmul.msk.bf16.vlgmr.msra.gmra.mxu3 %vm1245_vm14, %v1799_v27  ;;  %v1736_v30 = vmax.f32 %v1719_v7, %v1732_v26  ;;  %2899 = vpow2.f32 %v1743_v14  ;;  %v2225_v26 = vadd.f32 1.0, %v893_v28 }
 0x5ff   : > { %2642 = vmatmul.msk.bf16.vlgmr.msra.gmra.mxu2 %vm1245_vm14, %v1798_v3  ;;  %1990 = vmatpush.bf16.msra.mxu3 %v1981_v57 }
 0x600   : > { %v1752_v23 = vsub.f32 %v1703_v22, %v1736_v30  ;;  %v1740_v45 = vsub.f32 %v3758_v16, %v1736_v30  ;;  %1969 = vmatpush.bf16.msra.mxu2 %v1960_v18 }
 0x602   : > { %v2896_v53 = vpop.eup %2895  ;;  %v1759_v39 = vmul.f32 1.442695, %v1752_v23  ;;  %v1747_v63 = vmul.f32 1.442695, %v1740_v45  ;;  %v2226_v45 = vperm.slane %v2225_v26, 0 }
 0x603   : > { %v2898_v54 = vpop.eup %2897  ;;  %v1761_v11 = vsel %vm1707_vm3, %v2896_v53, 0.0  ;;  %v1793_v44 = vpack.c.bf16 %v2896_v53, %v2896_v53 }
 0x604   : > { %v1797_v51 = vpack.c.bf16 %v2898_v54, %v2898_v54  ;;  %1777 = vadd.xlane.f32.xlu0 %v1776_v56  ;;  %v1773_v62 = vsel %vm1720_vm4, %v2898_v54, 0.0  ;;  %1762 = vadd.xlane.f32.xlu1 %v1761_v11  ;;  %2901 = vpow2.f32 %v1759_v39  ;;  %v2900_v2 = vpop.eup %2899 }
 0x605   : > { %1774 = vadd.xlane.f32.xlu2 %v1773_v62  ;;  %2903 = vpow2.f32 %v1747_v63  ;;  %v1764_v34 = vsel %vm1707_vm3, %v2900_v2, 0.0  ;;  %v1794_v4 = vpack.c.bf16 %v2900_v2, %v2900_v2 }
 0x606   : > { %2641 = vmatmul.msk.bf16.vlgmr.msrb.gmra.mxu1 %vm1245_vm14, %v1797_v51 }
 0x607   : > { %1950 = vmatpush.bf16.msrb.mxu1 %v1941_v46  ;;  %v2922_v46 = vld [vmem:[%s3395_s16] sm:$0xff] }
 0x60a   : > { %v2902_v16 = vpop.eup %2901 }
 0x60b   : > { %v1800_v47 = vpack.c.bf16 %v2902_v16, %v2902_v16  ;;  %v2904_v5 = vpop.eup %2903  ;;  %v1782_v22 = vsel %vm1720_vm4, %v2902_v16, 0.0 }
 0x60c   : > { %1780 = vadd.xlane.f32.xlu1 %v1779_v0  ;;  %v1770_v9 = vsel %vm1707_vm3, %v2904_v5, 0.0  ;;  %v1796_v1 = vpack.c.bf16 %v2904_v5, %v2904_v5  ;;  %v3818_v5 = vperm.slane %v893_v28, 0 }
 0x60d   : > { %1765 = vadd.xlane.f32.xlu2 %v1764_v34  ;;  %2644 = vmatmul.msk.bf16.vlgmr.msra.gmra.mxu0 %vm1245_vm14, %v1800_v47 }
 0x60e   : > { %2647 = vmatmul.msk.bf16.vlgmr.msrb.gmra.mxu3 %vm1064_vm13, %v1795_v35  ;;  %2012 = vmatpush.bf16.msra.mxu0 %v2003_v33 }
 0x60f   : > { %2646 = vmatmul.msk.bf16.vlgmr.msrb.gmra.mxu2 %vm1064_vm13, %v1794_v4 }
 0x614   : > { %1771 = vadd.xlane.f32.xlu1 %v1770_v9 }
 0x615   : > { %1783 = vadd.xlane.f32.xlu2 %v1782_v22 }
 0x616   : > { %2645 = vmatmul.msk.bf16.vlgmr.msra.gmra.mxu1 %vm1064_vm13, %v1793_v44 }
 0x618   : > { %2025 = vrot.lane.b32.xlu0 %v1590_v31, %s3127_s20 }
 0x61d   : > { %2648 = vmatmul.msk.bf16.vlgmr.msrb.gmra.mxu0 %vm1064_vm13, %v1796_v1 }
 0x66f   : > { %v1769_v8 = vpop.xlane.xlu0 %1768 }
 0x677   : > { %v1763_v21 = vpop.xlane.xlu1 %1762  ;;  %v1778_v36 = vpop.xlane.xlu0 %1777 }
 0x678   : > { %v1775_v49 = vpop.xlane.xlu2 %1774 }
 0x679   : > { %v1785_v20 = vadd.f32 %v1775_v49, %v1763_v21 }
 0x67f   : > { %v1781_v42 = vpop.xlane.xlu1 %1780 }
 0x680   : > { %v1766_v24 = vpop.xlane.xlu2 %1765  ;;  %v1787_v40 = vadd.f32 %v1781_v42, %v1769_v8 }
 0x681   : > { %v1845_v10 = vpop.f32.mrf.mxu3  ;;  %v1786_v37 = vadd.f32 %v1778_v36, %v1766_v24 }
 0x682   : > { %v1829_v17 = vpop.f32.mrf.mxu2  ;;  %2905 = vrcp.f32 %v1787_v40 }
 0x683   : > { %v1813_v41 = vpop.f32.mrf.mxu1  ;;  %2907 = vrcp.f32 %v1785_v20 }
 0x684   : > { %2909 = vrcp.f32 %v1786_v37 }
 0x687   : > { %v1772_v3 = vpop.xlane.xlu1 %1771 }
 0x688   : > { %v1784_v30 = vpop.xlane.xlu2 %1783  ;;  %v2906_v53 = vpop.eup %2905 }
 0x689   : > { %v1847_v50 = vpop.f32.mrf.mxu3  ;;  %v2908_v54 = vpop.eup %2907  ;;  %v1788_v56 = vadd.f32 %v1784_v30, %v1772_v3 }
 0x68a   : > { %v2026_v52 = vpop.permute.xlu0 %2025  ;;  %v1831_v55 = vpop.f32.mrf.mxu2  ;;  %v2923_v50 = vld [vmem:[%s3374_s29] sm:$0xf]  ;;  %s4068_s29 = sld [smem:[#allocation33_spill]] }
 0x68b   : > { %v1815_v27 = vpop.f32.mrf.mxu1  ;;  %v2028_v32 = vmul.f32 %v2026_v52, %v3472_v19  ;;  %v1861_v7 = vpop.f32.mrf.mxu0  ;;  %2911 = vrcp.f32 %v1788_v56 }
 0x68c   : > { %v2910_v2 = vpop.eup %2909 }
 0x68d   : > { %2030 = vrot.lane.b32.xlu1 %v2028_v32, %s3127_s20 }
 0x691   : > { %v1909_v14 = vpop.f32.mrf.mxu3  ;;  %v2912_v31 = vpop.eup %2911 }
 0x692   : > { %v1910_v23 = vadd.f32 %v1909_v14, %v1845_v10  ;;  %v1893_v39 = vpop.f32.mrf.mxu2 }
 0x693   : > { %v1877_v29 = vpop.f32.mrf.mxu1  ;;  %v1894_v51 = vadd.f32 %v1893_v39, %v1829_v17  ;;  %v1863_v62 = vpop.f32.mrf.mxu0  ;;  %v2850_v17 = vld [vmem:[%s3991_s12] ss:$0 sm:$0xff]  ;;  %v2752_v39 = vld [vmem:[%s3992_s13 + $0x8] sm:$0xff] }
 0x694   : > { %v1931_v11 = vmul.f32 %v2906_v53, %v1910_v23  ;;  %v1878_v63 = vadd.f32 %v1877_v29, %v1813_v41  ;;  %2095 = vmatpush.bf16.msra.mxu1 %v2752_v39 }
 0x695   : > { %2228 = vrot.lane.b32.xlu1 %v2226_v45, %s3127_s20  ;;  %v1930_v0 = vmul.f32 %v2910_v2, %v1894_v51  ;;  %s4071_s20 = sld [smem:[#allocation38_spill]] }
 0x696   : > { %v1975_v16 = vpack.c.bf16 %v1931_v11, %v1931_v11  ;;  %v1929_v35 = vmul.f32 %v2908_v54, %v1878_v63  ;;  %v2751_v54 = vld [vmem:[%s3992_s13] sm:$0xff]  ;;  %v2761_v63 = vld [vmem:[#allocation7] sm:$0xff] }
 0x697   : > { %v1935_v47 = vpack.c.bf16 %v1930_v0, %v1930_v0 }
 0x698   : > { %v1933_v34 = vpack.c.bf16 %v1929_v35, %v1929_v35  ;;  %2651 = vmatmul.msk.bf16.vlgmr.msra.gmra.mxu3 %vm1064_vm13, %v1975_v16  ;;  %2096 = vmatpush.bf16.msra.mxu1 %v2751_v54  ;;  %v2760_v16 = vld [vmem:[%s4063_s3 + $0x38] sm:$0xff] }
 0x699   : > { %v1911_v4 = vpop.f32.mrf.mxu3  ;;  %2649 = vmatmul.msk.bf16.vlgmr.msrb.gmra.mxu1 %vm1064_vm13, %v1935_v47  ;;  %2180 = vmatpush.bf16.msrb.mxu2 %v2760_v16 }
 0x69a   : > { %2650 = vmatmul.msk.bf16.vlgmr.msra.gmra.mxu2 %vm1064_vm13, %v1933_v34  ;;  %v1895_v6 = vpop.f32.mrf.mxu2  ;;  %v2759_v34 = vld [vmem:[%s4064_s5 + $0x30] sm:$0xff] }
 0x69b   : > { %v1879_v9 = vpop.f32.mrf.mxu1  ;;  %v1925_v44 = vpop.f32.mrf.mxu0  ;;  %s2393_s0 = scalar_lea.hbm %s4071_s20, %s2737_s25 }
 0x69c   : > { %v1926_v22 = vadd.f32 %v1925_v44, %v1861_v7  ;;  %s2397_s23 = sshll.u32 %s2393_s0, 4  ;;  %s2398_s23 = int_to_ptr.hbm [resolvable:$true] %s2397_s23 }
 0x69d   : > { %2233 = vrot.lane.b32.xlu1 %v3818_v5, %s3126_s15  ;;  %2181 = vmatpush.bf16.msrb.mxu2 %v2759_v34 }
 0x69e   : > { %v1932_v1 = vmul.f32 %v2912_v31, %v1926_v22 }
 0x6a0   : > { %v1997_v12 = vpack.c.bf16 %v1932_v1, %v1932_v1 }
 0x6a2   : > { %2652 = vmatmul.msk.bf16.vlgmr.msra.gmra.mxu0 %vm1064_vm13, %v1997_v12 }
 0x6a3   : > { %v1927_v57 = vpop.f32.mrf.mxu0 }
 0x6ff   : > { %v2031_v13 = vpop.permute.xlu1 %2030 }
 0x700   : > { %v3824_v15 = vadd.f32 %v2922_v46, %v2031_v13 }
 0x702   : > { %v2037_v18 = vsel %vm853_vm0, %v3824_v15, 0.0 }
 0x703   : > { %2038 = vadd.xlane.f32.xlu2 %v2037_v18 }
 0x707   : > { %v2229_v57 = vpop.permute.xlu1 %2228 }
 0x70f   : > { %v2234_v59 = vpop.permute.xlu1 %2233 }
 0x716   : > { %v1952_v8 = vpop.f32.mrf.mxu1 }
 0x71b   : > { %v1992_v21 = vpop.f32.mrf.mxu3 }
 0x71d   : > { %v1971_v49 = vpop.f32.mrf.mxu2 }
 0x71e   : > { %v1972_v25 = vadd.f32 %v1971_v49, %v1952_v8  ;;  %v1954_v33 = vpop.f32.mrf.mxu1 }
 0x71f   : > { %v2014_v36 = vpop.f32.mrf.mxu0  ;;  %v2758_v33 = vld [vmem:[%s4064_s5 + $0x28] sm:$0xff] }
 0x720   : > { %v1996_v10 = vadd.f32 %v1992_v21, %v1972_v25  ;;  %2182 = vmatpush.bf16.msrb.mxu2 %v2758_v33 }
 0x722   : > { %v2018_v41 = vadd.f32 %v2014_v36, %v1996_v10  ;;  %v2757_v10 = vld [vmem:[%s4064_s5 + $0x20] sm:$0xff]  ;;  %v2756_v36 = vld [vmem:[%s4064_s5 + $0x18] sm:$0xff] }
 0x723   : > { %v1994_v42 = vpop.f32.mrf.mxu3 }
 0x724   : > { %v2023_v43 = vadd.f32 %v2850_v17, %v2018_v41  ;;  %2183 = vmatpush.bf16.msrb.mxu2 %v2757_v10  ;;  %v2770_v17 = vld [vmem:[%s4065_s21 + $0x38] sm:$0xff]  ;;  %v2769_v41 = vld [vmem:[%s4065_s21 + $0x30] sm:$0xff] }
 0x725   : > { %v1973_v48 = vpop.f32.mrf.mxu2  ;;  %2352 = vmatpush.bf16.msrb.mxu0 %v2770_v17  ;;  %v2755_v42 = vld [vmem:[%s4064_s5 + $0x10] sm:$0xff] }
 0x726   : > { %v2035_v24 = vmul.f32 %v3818_v5, %v2023_v43  ;;  %v2754_v43 = vld [vmem:[%s4064_s5 + $0x8] sm:$0xff]  ;;  %v2753_v48 = vld [vmem:[%s4064_s5] sm:$0xff] }
 0x727   : > { %v2016_v40 = vpop.f32.mrf.mxu0 }
 0x728   : > { %v3833_v20 = vadd.f32 %v2923_v50, %v2035_v24  ;;  %2184 = vmatpush.bf16.msrb.mxu2 %v2756_v36  ;;  %v2768_v24 = vld [vmem:[%s4065_s21 + $0x28] sm:$0xff]  ;;  %v2851_v40 = vld [vmem:[%s4066_s2] ss:$0 sm:$0xff]  ;;  %s2564_s2 = sshll.u32 %s3368_s18, 3 }
 0x729   : > { %2353 = vmatpush.bf16.msrb.mxu0 %v2769_v41  ;;  %v2767_v50 = vld [vmem:[%s4065_s21 + $0x20] sm:$0xff] }
 0x72a   : > { %v2203_v52 = vsel %vm934_vm1, %v3833_v20, 0.0 }
 0x72b   : > { %2204 = vadd.xlane.f32.xlu2 %v2203_v52 }
 0x72c   : > { %2185 = vmatpush.bf16.msrb.mxu2 %v2755_v42 }
 0x72d   : > { %2354 = vmatpush.bf16.msrb.mxu0 %v2768_v24 }
 0x730   : > { %2186 = vmatpush.bf16.msrb.mxu2 %v2754_v43 }
 0x731   : > { %2355 = vmatpush.bf16.msrb.mxu0 %v2767_v50 }
 0x734   : > { %2187 = vmatpush.bf16.msrb.mxu2 %v2753_v48 }
 0x776   : > { %v2039_v28 = vpop.xlane.xlu2 %2038 }
 0x777   : > { %v2040_v37 = vmul.f32 %v2039_v28, %v3431_v38  ;;  %v2766_v28 = vld [vmem:[%s4065_s21 + $0x18] sm:$0xff] }
 0x778   : > { %2356 = vmatpush.bf16.msrb.mxu0 %v2766_v28 }
 0x779   : > { %v2041_v55 = vsub.f32 %v3824_v15, %v2040_v37 }
 0x77b   : > { %v2042_v27 = vmul.f32 %v2041_v55, %v2041_v55 }
 0x77d   : > { %v2043_v32 = vsel %vm853_vm0, %v2042_v27, 0.0  ;;  %v2765_v27 = vld [vmem:[%s4065_s21 + $0x10] sm:$0xff] }
 0x77e   : > { %2044 = vadd.xlane.f32.xlu0 %v2043_v32  ;;  %2357 = vmatpush.bf16.msrb.mxu0 %v2765_v27 }
 0x79e   : > { %v2205_v7 = vpop.xlane.xlu2 %2204 }
 0x79f   : > { %v2206_v26 = vmul.f32 %v2205_v7, %v3431_v38 }
 0x7a1   : > { %v2207_v3 = vsub.f32 %v3833_v20, %v2206_v26 }
 0x7a3   : > { %v2208_v30 = vmul.f32 %v2207_v3, %v2207_v3 }
 0x7a5   : > { %v2209_v14 = vsel %vm934_vm1, %v2208_v30, 0.0 }
 0x7a6   : > { %2210 = vadd.xlane.f32.xlu2 %v2209_v14 }
 0x7be   : > { %2061 = vrot.lane.b32.xlu2 %v3472_v19, %s3128_s30  ;;  %v2762_v19 = vld [vmem:[#allocation7 + $0x8] sm:$0xff] }
 0x7bf   : > { %2267 = vmatpush.bf16.msrb.mxu3 %v2762_v19 }
 0x7c3   : > { %2268 = vmatpush.bf16.msrb.mxu3 %v2761_v63 }
 0x7f1   : > { %v2045_v23 = vpop.xlane.xlu0 %2044 }
 0x7f2   : > { %v2046_v53 = vmul.f32 %v2045_v23, %v3431_v38  ;;  %v2763_v23 = vld [vmem:[%s4065_s21] sm:$0xff] }
 0x7f4   : > { %v2047_v45 = vadd.f32 1e-06, %v2046_v53 }
 0x7f6   : > { %2913 = vrsqrt.f32 %v2047_v45  ;;  %vm2054_vm6 = vweird.f32 %v2047_v45 }
 0x7fc   : > { %v2914_v29 = vpop.eup %2913 }
 0x7fd   : > { %v2049_v56 = vmul.f32 %v2914_v29, %v2047_v45  ;;  %vm2055_vm5 = vweird.f32 %v2914_v29 }
 0x7fe   : > { %vm2056_vm7 = vmor %vm2054_vm6, %vm2055_vm5 }
 0x7ff   : > { %v2050_v11 = vmul.f32 %v2914_v29, %v2049_v56 }
 0x801   : > { %v2051_v51 = vmul.f32 0.5, %v2050_v11 }
 0x803   : > { %v2052_v62 = vsub.f32 1.5, %v2051_v51 }
 0x805   : > { %v2053_v2 = vmul.f32 %v2914_v29, %v2052_v62 }
 0x807   : > { %v2057_v35 = vsel %vm2056_vm7, %v2914_v29, %v2053_v2  ;;  %v2852_v29 = vld [vmem:[%s4067_s26] ss:$0 sm:$0xff] }
 0x808   : > { %v2058_v6 = vmul.f32 %v2057_v35, %v2041_v55 }
 0x80a   : > { %v2059_v9 = vmul.f32 %v2058_v6, %v958_v61 }
 0x819   : > { %v2211_v0 = vpop.xlane.xlu2 %2210 }
 0x81a   : > { %v2212_v47 = vmul.f32 %v2211_v0, %v3431_v38 }
 0x81c   : > { %v2213_v4 = vadd.f32 1e-06, %v2212_v47 }
 0x81e   : > { %2915 = vrsqrt.f32 %v2213_v4  ;;  %vm2220_vm9 = vweird.f32 %v2213_v4 }
 0x821   : > { %v2062_v44 = vpop.permute.xlu2 %2061 }
 0x822   : > { %v2064_v22 = vadd.f32 %v2062_v44, %v2059_v9  ;;  %v2853_v9 = vld [vmem:[%s4068_s29] ss:$0 sm:$0xff]  ;;  %s768_s29 = scalar_lea.vmem [#allocation8], %s2564_s2  ;;  %s3034_s2 = scalar_lea.hbm %s4071_s20, 16 }
 0x823   : > { %s2395_s16 = sshll.u32 %s768_s29, 4  ;;  %s2396_s16 = int_to_ptr.vmem [resolvable:$true] %s2395_s16 }
 0x824   : > { %v2916_v31 = vpop.eup %2915  ;;  %v2065_v1 = vpack.c.bf16 %v2064_v22, %v2064_v22 }
 0x825   : > { %v2215_v12 = vmul.f32 %v2916_v31, %v2213_v4  ;;  %vm2221_vm8 = vweird.f32 %v2916_v31 }
 0x826   : > { %2661 = vmatmul.msk.bf16.vlgmr.msra.gmra.mxu1 %vm853_vm0, %v2065_v1  ;;  %vm2222_vm10 = vmor %vm2220_vm9, %vm2221_vm8  ;;  %v2854_v1 = vld [vmem:[%s4069_s17] ss:$0 sm:$0xff]  ;;  %s3028_s17 = sshra.s32 %s2398_s23, 4  ;;  %s3029_s17 = int_to_ptr.hbm [resolvable:$true] %s3028_s17 }
 0x827   : > { %v2216_v38 = vmul.f32 %v2916_v31, %v2215_v12  ;;  %p3035_p9 = scmp.lt.s32.totalorder %s3029_s17, %s4071_s20 }
 0x829   : > { %v2217_v13 = vmul.f32 0.5, %v2216_v38 }
 0x82b   : > { %v2218_v46 = vsub.f32 1.5, %v2217_v13 }
 0x82d   : > { %v2219_v18 = vmul.f32 %v2916_v31, %v2218_v46 }
 0x82f   : > { %v2223_v8 = vsel %vm2222_vm10, %v2916_v31, %v2219_v18 }
 0x830   : > { %v2224_v21 = vmul.f32 %v2223_v8, %v2207_v3  ;;  %v2764_v3 = vld [vmem:[%s4065_s21 + $0x8] sm:$0xff] }
 0x831   : > { %2358 = vmatpush.bf16.msrb.mxu0 %v2764_v3 }
 0x832   : > { %v2231_v49 = vmul.f32 %v2229_v57, %v2224_v21 }
 0x834   : > { %v2236_v61 = vadd.f32 %v2234_v59, %v2231_v49 }
 0x835   : > { %2359 = vmatpush.bf16.msrb.mxu0 %v2763_v23 }
 0x836   : > { %v2237_v25 = vpack.c.bf16 %v2236_v61, %v2236_v61 }
 0x838   : > { %2702 = vmatmul.msk.bf16.vlgmr.msrb.gmra.mxu3 %vm853_vm0, %v2237_v25 }
 0x8a3   : > { %v2098_v52 = vpop.f32.mrf.mxu1 }
 0x8a4   : > { %v2099_v37 = vadd.f32 %v2851_v40, %v2098_v52 }
 0x8a6   : > { %v2103_v55 = vmul.f32 0.044715, %v2099_v37  ;;  %v2102_v45 = vmul.f32 0.5, %v2099_v37 }
 0x8a8   : > { %v2104_v32 = vmul.f32 %v2103_v55, %v2099_v37 }
 0x8aa   : > { %v2105_v7 = vmul.f32 %v2104_v32, %v2099_v37 }
 0x8ab   : > { %v2100_v26 = vpop.f32.mrf.mxu1 }
 0x8ac   : > { %v2106_v30 = vadd.f32 %v2105_v7, %v2099_v37 }
 0x8ae   : > { %v2107_v14 = vmul.f32 0.7978846, %v2106_v30 }
 0x8b0   : > { %2917 = vtanh.f32 %v2107_v14 }
 0x8b6   : > { %v2918_v53 = vpop.eup %2917 }
 0x8b7   : > { %v2109_v39 = vadd.f32 1.0, %v2918_v53 }
 0x8b9   : > { %v2110_v54 = vmul.f32 %v2109_v39, %v2102_v45 }
 0x8bb   : > { %v2270_v56 = vpop.f32.mrf.mxu3  ;;  %v2111_v11 = vpack.c.bf16 %v2110_v54, %v2110_v54 }
 0x8bc   : > { %v2271_v51 = vadd.f32 %v2852_v29, %v2270_v56 }
 0x8bd   : > { %2188 = vmatmul.bf16.vlgmr.msrb.gmra.mxu2 %v2111_v11 }
 0x8be   : > { %v2275_v19 = vmul.f32 0.044715, %v2271_v51  ;;  %v2274_v47 = vmul.f32 0.5, %v2271_v51 }
 0x8c0   : > { %v2276_v62 = vmul.f32 %v2275_v19, %v2271_v51 }
 0x8c2   : > { %v2277_v63 = vmul.f32 %v2276_v62, %v2271_v51 }
 0x8c3   : > { %v2272_v2 = vpop.f32.mrf.mxu3 }
 0x8c4   : > { %v2278_v16 = vadd.f32 %v2277_v63, %v2271_v51 }
 0x8c6   : > { %v2279_v0 = vmul.f32 0.7978846, %v2278_v16 }
 0x8c8   : > { %2919 = vtanh.f32 %v2279_v0 }
 0x8ce   : > { %v2920_v35 = vpop.eup %2919 }
 0x8cf   : > { %v2281_v34 = vadd.f32 1.0, %v2920_v35 }
 0x8d1   : > { %v2282_v4 = vmul.f32 %v2281_v34, %v2274_v47 }
 0x8d3   : > { %v2283_v6 = vpack.c.bf16 %v2282_v4, %v2282_v4 }
 0x8d5   : > { %2360 = vmatmul.bf16.vlgmr.msrb.gmra.mxu0 %v2283_v6 }
 0x940   : > { %v2189_v44 = vpop.f32.mrf.mxu2 }
 0x941   : > { %v2190_v22 = vadd.f32 %v2853_v9, %v2189_v44 }
 0x943   : > { %2194 = vrot.lane.b32.xlu1 %v2190_v22, %s3128_s30 }
 0x948   : > { %v2191_v31 = vpop.f32.mrf.mxu2 }
 0x952   : > { %v2361_v12 = vpop.f32.mrf.mxu0 }
 0x953   : > { %v2362_v38 = vadd.f32 %v2854_v1, %v2361_v12 }
 0x955   : > { %2366 = vrot.lane.b32.xlu1 %v2362_v38, %s3126_s15 }
 0x95a   : > { %v2363_v57 = vpop.f32.mrf.mxu0 }
 0x9b5   : > { %v2195_v13 = vpop.permute.xlu1 %2194 }
 0x9b6   : > { %v2197_v46 = vmul.f32 %v2195_v13, %v964_v60 }
 0x9b8   : > { %2199 = vrot.lane.b32.xlu2 %v2197_v46, %s3126_s15  ;;  %s2378_s15 = scalar_lea.sflag [#allocation4], %s3368_s18 }
 0x9c7   : > { %v2367_v18 = vpop.permute.xlu1 %2366 }
 0x9c8   : > { %v2369_v8 = vmul.f32 %v2367_v18, %v3818_v5 }
 0x9ca   : > { %2371 = vrot.lane.b32.xlu1 %v2369_v8, %s3128_s30  ;;  %s3030_s30 = scalar_lea.hbm %s3029_s17, 8 }
 0x9cb   : > { %p3031_p1 = scmp.ne.s32.totalorder %s3029_s17, %s3030_s30  ;;  %p3036_p8 = scmp.lt.s32.totalorder %s3034_s2, %s3030_s30 }
 0x9cd   : > { %p3032_p13 = pnand %p3031_p1, %p3311_p0  ;;  %p3037_p10 = por %p3036_p8, %p3035_p9 }
 0x9cf   : > { %p3033_p7 = pneg %p3032_p13 }
 0x9d1   : > { %p3038_p11 = pnand %p3037_p10, %p3033_p7 }
 0xa12   : > { %v2200_v58 = vpop.permute.xlu2 %2199 }
 0xa13   : > { %v2202_v60 = vadd.f32 %v2200_v58, %v3824_v15 }
 0xa15   : > { %2375 = vst.msk [vmem:[%s768_s29] sm:$0xff] %vm853_vm0, %v2202_v60 }
 0xa16   : > { %3041 = shalt.err (!%p3038_p11)
}
 0xa17   : > { %2779 = dma.vmem_to_hbm [thread:$0]  (%p3311_p0), %s2396_s16, 128, %s2398_s23, %s2378_s15  }
 0xa18   : > { %s2738_s29 = sshll.u32 %s3271_s1, 2  ;;  %s4072_s6 = sld [smem:[#allocation39_spill]] }
 0xa19   : > { %s4073_s5 = sshll.u32 %s3368_s18, 2  ;;  %s2383_s30 = scalar_lea.sflag [#allocation10], %s3368_s18 }
 0xa1a   : > { %s775_s7 = scalar_lea.vmem [#allocation9], %s4073_s5 }
 0xa1b   : > { %s2409_s26 = sshll.u32 %s775_s7, 4  ;;  %s2410_s26 = int_to_ptr.vmem [resolvable:$true] %s2409_s26 }
 0xa1e   : > { %s2407_s25 = scalar_lea.hbm %s4072_s6, %s2738_s29  ;;  %s3062_s4 = scalar_lea.hbm %s4072_s6, 8 }
 0xa1f   : > { %s2411_s17 = sshll.u32 %s2407_s25, 4  ;;  %s2412_s17 = int_to_ptr.hbm [resolvable:$true] %s2411_s17 }
 0xa20   : > { %s3056_s2 = sshra.s32 %s2412_s17, 4  ;;  %s3057_s2 = int_to_ptr.hbm [resolvable:$true] %s3056_s2 }
 0xa21   : > { %s3058_s16 = scalar_lea.hbm %s3057_s2, 4  ;;  %p3063_p4 = scmp.lt.s32.totalorder %s3057_s2, %s4072_s6 }
 0xa22   : > { %p3059_p5 = scmp.ne.s32.totalorder %s3057_s2, %s3058_s16  ;;  %p3064_p3 = scmp.lt.s32.totalorder %s3062_s4, %s3058_s16 }
 0xa24   : > { %p3060_p12 = pnand %p3059_p5, %p3311_p0  ;;  %p3065_p1 = por %p3064_p3, %p3063_p4 }
 0xa26   : > { %p3061_p2 = pneg %p3060_p12 }
 0xa28   : > { %p3066_p13 = pnand %p3065_p1, %p3061_p2 }
 0xa3c   : > { %v2372_v5 = vpop.permute.xlu1 %2371 }
 0xa3d   : > { %v2374_v15 = vadd.f32 %v2372_v5, %v3833_v20 }
 0xa3f   : > { %2376 = vst.msk [vmem:[%s775_s7] sm:$0xf] %vm934_vm1, %v2374_v15 }
 0xa40   : > { %3069 = shalt.err (!%p3066_p13)
}
 0xa41   : > { %2780 = dma.vmem_to_hbm [thread:$0]  (%p3311_p0), %s2410_s26, 64, %s2412_s17, %s2383_s30  }
 0xa42 PF: > { %s4074_s7 = sld [smem:[#allocation16_spill]] }
 0xa43   : > { %s4076_s15 = sld [smem:[#allocation18_spill]] }
 0xa48   : > { %s2423_s0 = sand.u32 1, %s4074_s7  }
 0xa49   : > { %p4077_p7 = scmp.ge.s32.totalorder %s4076_s15, 2  ;;  %s2424_s29 = scalar_lea.sflag [#allocation4], %s2423_s0 }
 0xa4b   : > { %p2795_p9 = pnand %p4077_p7, %p3319_p6 }
 0xa4d   : > { %p2796_p8 = pneg %p2795_p9 }
 0xa4f   : > { %3099 = dma.done.wait (%p2796_p8), %s2424_s29, 128  }
 0xa50   : > { %3101 = vsyncadd (%p2796_p8), %s2424_s29, 4294967168  ;;  %s2434_s25 = scalar_lea.sflag [#allocation10], %s2423_s0 }
 0xa51   : > { %3103 = dma.done.wait (%p2796_p8), %s2434_s25, 64  }
 0xa52   : > { %3105 = vsyncadd (%p2796_p8), %s2434_s25, 4294967232  ;;  %s4078_s30 = sld [smem:[#allocation19_spill]]  ;;  %s4081_s3 = smov %s3112_s28 }
 0xa53   : > { %s4079_s2 = sld [smem:[#allocation17_spill]] }
 0xa54   : > { %s4080_s29 = sld [smem:[#allocation20_spill]] }
 0xa58   : > { %p42_p0 = scmp.ge.s32.totalorder %s4078_s30, 4  }
 0xa59   : > { %s4082_s28 = smov %s4079_s2 }
 0xa5a   :  { %44 = sbr.rel (!%p42_p0) target bundleno = 27 (0x1b), region = 186 }
 0xa5f   :  { %2440 = vsyncpa [#allocation3], 1 }
 0xa60   :  { %2442 = vsyncpa [#allocation3 + $0x1], 1 }
 0xa61   :  { %2443 = vsyncpa [#allocation6], 1 }
 0xa62   :  { %2445 = vsyncpa [#allocation6 + $0x1], 1 }
 0xa63   :  { %2446 = vsyncpa [#allocation4], 1 }
 0xa64   :  { %2448 = vsyncpa [#allocation4 + $0x1], 1 }
 0xa65   :  { %2449 = vsyncpa [#allocation10], 1 }
 0xa66   :  { %2451 = vsyncpa [#allocation10 + $0x1], 1 }

</bundles_post_ra>
